<compile_context>
chip_gen: v6e
topology: v6e:2x2x1
jax: 0.10.0
libtpu: 0.0.40
codegen_flags: <defaults>
</compile_context>

<pallas_src>
import jax
import jax.numpy as jnp
from jax.experimental import pallas as pl
from jax.experimental.pallas import tpu as pltpu

HID_PAD = 256       # text_nn / image_nn hidden width 200 -> 256 (lane-dense)
N_CLASSES = 7

# Weight-slab row offsets (all multiples of 16 -> bf16 sublane-tile aligned views).
OFF_WT = 0                    # text_nn W        [1200, 256]
OFF_WI = OFF_WT + 1200        # image_nn W       [368,  256]
OFF_W1A = OFF_WI + 368        # out_nn W1 speech [512,  256]
OFF_W1T = OFF_W1A + 512       # out_nn W1 text   [256,  256]
OFF_W1I = OFF_W1T + 256       # out_nn W1 image  [256,  256]
OFF_W2 = OFF_W1I + 256        # out_nn W2        [256,  256]
OFF_B = OFF_W2 + 256          # bias block       [16,   256] (8 used, 8 zero pad)
SLAB_ROWS = OFF_B + 16        # 2864 = 179 * 16


def mm2_kernel(xa_ref, xt_ref, xi_ref, w_ref, out_ref):
    f32, bf16 = jnp.float32, jnp.bfloat16

    # Biases: rows [OFF_B, OFF_B+4) are bf16 "hi" halves, [OFF_B+4, OFF_B+8) the
    # bf16 "lo" residuals; hi+lo reconstructs ~f32-precision biases in one add.
    bias_blk = w_ref[OFF_B:OFF_B + 8, :].astype(f32)          # [8, 256]
    bias_all = bias_blk[0:4, :] + bias_blk[4:8, :]            # [4, 256]: bt, bi, b1, b2
    bt = bias_all[0:1, :]
    bi = bias_all[1:2, :]
    b1 = bias_all[2:3, :]
    b2 = bias_all[3:4, :]

    # text_nn: Linear(200*6 -> 200 [padded 256]) + ReLU
    ht = jnp.dot(xt_ref[...], w_ref[OFF_WT:OFF_WI, :], preferred_element_type=f32) + bt
    ht = jnp.maximum(ht, 0.0).astype(bf16)

    # image_nn: Linear(368 -> 200 [padded 256]) + ReLU
    hi = jnp.dot(xi_ref[...], w_ref[OFF_WI:OFF_W1A, :], preferred_element_type=f32) + bi
    hi = jnp.maximum(hi, 0.0).astype(bf16)

    # out_nn layer 0: Linear(512+200+200 -> 256) on cat([xa, ht, hi], dim=1),
    # expressed as a split matmul over the three row-blocks of W1 (identical to
    # concat-then-matmul; avoids a lane-axis concatenate in-kernel).
    h = (jnp.dot(xa_ref[...], w_ref[OFF_W1A:OFF_W1T, :], preferred_element_type=f32)
         + jnp.dot(ht, w_ref[OFF_W1T:OFF_W1I, :], preferred_element_type=f32)
         + jnp.dot(hi, w_ref[OFF_W1I:OFF_W2, :], preferred_element_type=f32)
         + b1)
    h = jnp.maximum(h, 0.0).astype(bf16)

    # out_nn layer 2: Linear(256 -> 7 [padded 256]); padded lanes are exactly zero.
    out_ref[...] = jnp.dot(h, w_ref[OFF_W2:OFF_B, :], preferred_element_type=f32) + b2


def mm2_forward(xa, xt, xi, prep):
    B = xa.shape[0]
    bf16 = jnp.bfloat16
    slab = prep["slab"]

    flops = 2 * B * HID_PAD * (1200 + 368 + 512 + 256 + 256 + 256)
    bytes_accessed = (int(slab.size) * 2                       # bf16 weight slab
                      + (xa.size + xt.size + xi.size) * 2      # bf16 activations
                      + B * HID_PAD * 4)                       # f32 output

    vmem = pl.BlockSpec(memory_space=pltpu.MemorySpace.VMEM)
    out = pl.pallas_call(
        mm2_kernel,
        out_shape=jax.ShapeDtypeStruct((B, HID_PAD), jnp.float32),
        in_specs=[vmem, vmem, vmem, vmem],
        out_specs=vmem,
        cost_estimate=pl.CostEstimate(flops=int(flops), transcendentals=0,
                                      bytes_accessed=int(bytes_accessed)),
    )(xa.astype(bf16), xt.astype(bf16), xi.astype(bf16), slab)
    return out[:, :N_CLASSES]


def init_params(key):
    """Deterministic synthetic weights matching MM2's layer shapes (PyTorch-style init)."""
    ks = jax.random.split(key, 4)

    def lin(k, fan_in, fan_out):
        bound = 1.0 / jnp.sqrt(jnp.float32(fan_in))
        kw, kb = jax.random.split(k)
        w = jax.random.uniform(kw, (fan_in, fan_out), jnp.float32, -bound, bound)
        b = jax.random.uniform(kb, (1, fan_out), jnp.float32, -bound, bound)
        return w, b

    wt, bt = lin(ks[0], 200 * 6, 200)            # text_nn
    wi, bi = lin(ks[1], 368, 200)                # image_nn
    w1, b1 = lin(ks[2], 512 + 200 + 200, 256)    # out_nn layer 0
    w2, b2 = lin(ks[3], 256, 7)                  # out_nn layer 2
    return {"wt": wt, "bt": bt, "wi": wi, "bi": bi,
            "w1": w1, "b1": b1, "w2": w2, "b2": b2}


def prepare_params(p):
    """Pad to lane-dense widths, split W1, and pack all weights + biases into one bf16 slab."""
    bf16, f32 = jnp.bfloat16, jnp.float32

    def pad_cols(w, n=HID_PAD):
        return jnp.pad(w, ((0, 0), (0, n - w.shape[1])))

    def pad_rows(w, n):
        return jnp.pad(w, ((0, n - w.shape[0]), (0, 0)))

    wt = pad_cols(p["wt"])                       # [1200, 256]
    wi = pad_cols(p["wi"])                       # [368,  256]
    w1a = p["w1"][:512]                          # [512,  256]
    w1t = pad_rows(p["w1"][512:712], HID_PAD)    # [256,  256]
    w1i = pad_rows(p["w1"][712:912], HID_PAD)    # [256,  256]
    w2 = pad_cols(p["w2"])                       # [256,  256]

    def split_bias(b):
        """f32 [1,n] -> (hi, lo) bf16 rows with hi+lo ~ b to f32 precision."""
        b = pad_cols(b)
        hi = b.astype(bf16)
        lo = (b - hi.astype(f32)).astype(bf16)
        return hi, lo

    bt_hi, bt_lo = split_bias(p["bt"])
    bi_hi, bi_lo = split_bias(p["bi"])
    b1_hi, b1_lo = split_bias(p["b1"])
    b2_hi, b2_lo = split_bias(p["b2"])

    bias_rows = jnp.concatenate(
        [bt_hi, bi_hi, b1_hi, b2_hi,             # rows OFF_B .. OFF_B+3  (hi)
         bt_lo, bi_lo, b1_lo, b2_lo,             # rows OFF_B+4 .. OFF_B+7 (lo)
         jnp.zeros((SLAB_ROWS - OFF_B - 8, HID_PAD), bf16)], axis=0)

    slab = jnp.concatenate(
        [wt.astype(bf16), wi.astype(bf16), w1a.astype(bf16),
         w1t.astype(bf16), w1i.astype(bf16), w2.astype(bf16), bias_rows], axis=0)
    assert slab.shape == (SLAB_ROWS, HID_PAD)
    return {"slab": slab}


def mm2_reference_matched(xa, xt, xi, prep):
    """Same bf16-weight / f32-accum math as the kernel, in plain jnp (strict check)."""
    f32, bf16 = jnp.float32, jnp.bfloat16
    s = prep["slab"]
    xa, xt, xi = xa.astype(bf16), xt.astype(bf16), xi.astype(bf16)

    blk = s[OFF_B:OFF_B + 8].astype(f32)
    bias_all = blk[0:4] + blk[4:8]
    bt, bi, b1, b2 = bias_all[0:1], bias_all[1:2], bias_all[2:3], bias_all[3:4]

    ht = jnp.maximum(jnp.dot(xt, s[OFF_WT:OFF_WI], preferred_element_type=f32) + bt, 0.0).astype(bf16)
    hi = jnp.maximum(jnp.dot(xi, s[OFF_WI:OFF_W1A], preferred_element_type=f32) + bi, 0.0).astype(bf16)
    h = jnp.maximum(
        jnp.dot(xa, s[OFF_W1A:OFF_W1T], preferred_element_type=f32)
        + jnp.dot(ht, s[OFF_W1T:OFF_W1I], preferred_element_type=f32)
        + jnp.dot(hi, s[OFF_W1I:OFF_W2], preferred_element_type=f32)
        + b1, 0.0).astype(bf16)
    out = jnp.dot(h, s[OFF_W2:OFF_B], preferred_element_type=f32) + b2
    return out[:, :N_CLASSES]


def mm2_reference_f32(xa, xt, xi, p):
    """Original full-f32 math (loose sanity check vs the bf16 kernel)."""
    ht = jnp.maximum(xt @ p["wt"] + p["bt"], 0.0)
    hi = jnp.maximum(xi @ p["wi"] + p["bi"], 0.0)
    h = jnp.maximum(jnp.concatenate([xa, ht, hi], axis=1) @ p["w1"] + p["b1"], 0.0)
    return h @ p["w2"] + p["b2"]


if __name__ == "__main__":
    key = jax.random.PRNGKey(0)
    k_xa, k_xt, k_xi, k_p = jax.random.split(key, 4)

    B = 2
    xa = jax.random.normal(k_xa, (B, 512), jnp.float32)       # speech embedding
    xt = jax.random.normal(k_xt, (B, 200 * 6), jnp.float32)   # text features
    xi = jax.random.normal(k_xi, (B, 368), jnp.float32)       # pooled image features

    params = init_params(k_p)
    prep = prepare_params(params)

    out = jax.block_until_ready(mm2_forward(xa, xt, xi, prep))
    assert out.shape == (B, N_CLASSES)

    # strict check vs. identical-math (bf16 weights, f32 accum) reference
    ref_matched = mm2_reference_matched(xa, xt, xi, prep)
    assert jnp.allclose(out, ref_matched, atol=2e-3, rtol=2e-3)

    # loose sanity check vs. the original full-f32 math
    ref_f32 = mm2_reference_f32(xa, xt, xi, params)
    assert jnp.max(jnp.abs(out - ref_f32)) < 0.1

    print("KERNEL_OK")
</pallas_src>

<mosaic_0001>
module attributes {stable_mosaic.version = 11 : i64} {
  func.func @mm2_kernel(%arg0: memref<2x512xbf16, #tpu.memory_space<vmem>>, %arg1: memref<2x1200xbf16, #tpu.memory_space<vmem>>, %arg2: memref<2x368xbf16, #tpu.memory_space<vmem>>, %arg3: memref<2864x256xbf16, #tpu.memory_space<vmem>>, %arg4: memref<2x256xf32, #tpu.memory_space<vmem>>) attributes {dimension_semantics = [], scalar_prefetch = 0 : i64, scratch_operands = 0 : i64, tpu.core_type = #tpu.core_type<tc>} {
    %c2848 = arith.constant 2848 : index
    %c0 = arith.constant 0 : index
    %0 = vector.load %arg3[%c2848, %c0] : memref<2864x256xbf16, #tpu.memory_space<vmem>>, vector<8x256xbf16>
    %1 = arith.extf %0 : vector<8x256xbf16> to vector<8x256xf32>
    %2 = vector.extract_strided_slice %1 {offsets = [0, 0], sizes = [4, 256], strides = [1, 1]} : vector<8x256xf32> to vector<4x256xf32>
    %3 = vector.extract_strided_slice %1 {offsets = [4, 0], sizes = [4, 256], strides = [1, 1]} : vector<8x256xf32> to vector<4x256xf32>
    %4 = arith.addf %2, %3 : vector<4x256xf32>
    %5 = vector.extract_strided_slice %4 {offsets = [0, 0], sizes = [1, 256], strides = [1, 1]} : vector<4x256xf32> to vector<1x256xf32>
    %6 = vector.extract_strided_slice %4 {offsets = [1, 0], sizes = [1, 256], strides = [1, 1]} : vector<4x256xf32> to vector<1x256xf32>
    %7 = vector.extract_strided_slice %4 {offsets = [2, 0], sizes = [1, 256], strides = [1, 1]} : vector<4x256xf32> to vector<1x256xf32>
    %8 = vector.extract_strided_slice %4 {offsets = [3, 0], sizes = [1, 256], strides = [1, 1]} : vector<4x256xf32> to vector<1x256xf32>
    %c0_0 = arith.constant 0 : index
    %c0_1 = arith.constant 0 : index
    %9 = vector.load %arg1[%c0_0, %c0_1] : memref<2x1200xbf16, #tpu.memory_space<vmem>>, vector<2x1200xbf16>
    %c0_2 = arith.constant 0 : index
    %c0_3 = arith.constant 0 : index
    %10 = vector.load %arg3[%c0_2, %c0_3] : memref<2864x256xbf16, #tpu.memory_space<vmem>>, vector<1200x256xbf16>
    %cst = arith.constant dense<0.000000e+00> : vector<2x256xf32>
    %11 = tpu.matmul %9, %10, %cst {dimension_numbers = #tpu.dot_dimension_numbers<[1], [0], [0], [1], [0, 0, 1, 1], [], []>} : vector<2x1200xbf16>, vector<1200x256xbf16>, vector<2x256xf32> -> vector<2x256xf32>
    %12 = vector.broadcast %5 : vector<1x256xf32> to vector<2x256xf32>
    %13 = arith.addf %11, %12 : vector<2x256xf32>
    %cst_4 = arith.constant 0.000000e+00 : f32
    %14 = vector.broadcast %cst_4 : f32 to vector<2x256xf32>
    %15 = arith.maximumf %13, %14 : vector<2x256xf32>
    %16 = arith.truncf %15 : vector<2x256xf32> to vector<2x256xbf16>
    %c0_5 = arith.constant 0 : index
    %c0_6 = arith.constant 0 : index
    %17 = vector.load %arg2[%c0_5, %c0_6] : memref<2x368xbf16, #tpu.memory_space<vmem>>, vector<2x368xbf16>
    %c1200 = arith.constant 1200 : index
    %c0_7 = arith.constant 0 : index
    %18 = vector.load %arg3[%c1200, %c0_7] : memref<2864x256xbf16, #tpu.memory_space<vmem>>, vector<368x256xbf16>
    %cst_8 = arith.constant dense<0.000000e+00> : vector<2x256xf32>
    %19 = tpu.matmul %17, %18, %cst_8 {dimension_numbers = #tpu.dot_dimension_numbers<[1], [0], [0], [1], [0, 0, 1, 1], [], []>} : vector<2x368xbf16>, vector<368x256xbf16>, vector<2x256xf32> -> vector<2x256xf32>
    %20 = vector.broadcast %6 : vector<1x256xf32> to vector<2x256xf32>
    %21 = arith.addf %19, %20 : vector<2x256xf32>
    %cst_9 = arith.constant 0.000000e+00 : f32
    %22 = vector.broadcast %cst_9 : f32 to vector<2x256xf32>
    %23 = arith.maximumf %21, %22 : vector<2x256xf32>
    %24 = arith.truncf %23 : vector<2x256xf32> to vector<2x256xbf16>
    %c0_10 = arith.constant 0 : index
    %c0_11 = arith.constant 0 : index
    %25 = vector.load %arg0[%c0_10, %c0_11] : memref<2x512xbf16, #tpu.memory_space<vmem>>, vector<2x512xbf16>
    %c1568 = arith.constant 1568 : index
    %c0_12 = arith.constant 0 : index
    %26 = vector.load %arg3[%c1568, %c0_12] : memref<2864x256xbf16, #tpu.memory_space<vmem>>, vector<512x256xbf16>
    %cst_13 = arith.constant dense<0.000000e+00> : vector<2x256xf32>
    %27 = tpu.matmul %25, %26, %cst_13 {dimension_numbers = #tpu.dot_dimension_numbers<[1], [0], [0], [1], [0, 0, 1, 1], [], []>} : vector<2x512xbf16>, vector<512x256xbf16>, vector<2x256xf32> -> vector<2x256xf32>
    %c2080 = arith.constant 2080 : index
    %c0_14 = arith.constant 0 : index
    %28 = vector.load %arg3[%c2080, %c0_14] : memref<2864x256xbf16, #tpu.memory_space<vmem>>, vector<256x256xbf16>
    %cst_15 = arith.constant dense<0.000000e+00> : vector<2x256xf32>
    %29 = tpu.matmul %16, %28, %cst_15 {dimension_numbers = #tpu.dot_dimension_numbers<[1], [0], [0], [1], [0, 0, 1, 1], [], []>} : vector<2x256xbf16>, vector<256x256xbf16>, vector<2x256xf32> -> vector<2x256xf32>
    %30 = arith.addf %27, %29 : vector<2x256xf32>
    %c2336 = arith.constant 2336 : index
    %c0_16 = arith.constant 0 : index
    %31 = vector.load %arg3[%c2336, %c0_16] : memref<2864x256xbf16, #tpu.memory_space<vmem>>, vector<256x256xbf16>
    %cst_17 = arith.constant dense<0.000000e+00> : vector<2x256xf32>
    %32 = tpu.matmul %24, %31, %cst_17 {dimension_numbers = #tpu.dot_dimension_numbers<[1], [0], [0], [1], [0, 0, 1, 1], [], []>} : vector<2x256xbf16>, vector<256x256xbf16>, vector<2x256xf32> -> vector<2x256xf32>
    %33 = arith.addf %30, %32 : vector<2x256xf32>
    %34 = vector.broadcast %7 : vector<1x256xf32> to vector<2x256xf32>
    %35 = arith.addf %33, %34 : vector<2x256xf32>
    %cst_18 = arith.constant 0.000000e+00 : f32
    %36 = vector.broadcast %cst_18 : f32 to vector<2x256xf32>
    %37 = arith.maximumf %35, %36 : vector<2x256xf32>
    %38 = arith.truncf %37 : vector<2x256xf32> to vector<2x256xbf16>
    %c2592 = arith.constant 2592 : index
    %c0_19 = arith.constant 0 : index
    %39 = vector.load %arg3[%c2592, %c0_19] : memref<2864x256xbf16, #tpu.memory_space<vmem>>, vector<256x256xbf16>
    %cst_20 = arith.constant dense<0.000000e+00> : vector<2x256xf32>
    %40 = tpu.matmul %38, %39, %cst_20 {dimension_numbers = #tpu.dot_dimension_numbers<[1], [0], [0], [1], [0, 0, 1, 1], [], []>} : vector<2x256xbf16>, vector<256x256xbf16>, vector<2x256xf32> -> vector<2x256xf32>
    %41 = vector.broadcast %8 : vector<1x256xf32> to vector<2x256xf32>
    %42 = arith.addf %40, %41 : vector<2x256xf32>
    %c0_21 = arith.constant 0 : index
    %c0_22 = arith.constant 0 : index
    %43 = vector.load %arg4[%c0_21, %c0_22] : memref<2x256xf32, #tpu.memory_space<vmem>>, vector<2x256xf32>
    tpu.vector_store %arg4[%c0_21, %c0_22], %42 {strides = array<i32>} : memref<2x256xf32, #tpu.memory_space<vmem>>, vector<2x256xf32>,
    return
  }
}

</mosaic_0001>

<bundles_post_ra>
// kernel: tpu_custom_call.1
= control target key start
LH: loop header
LB: loop body
LE: loop exit
PB: predicated region body
PF: predicated region fallthrough
CT: control target
= control target key end

     0   :  { %9 = vsyncpa [#allocation3], 0  ;;  %s4068_s0 = inlined_call_operand.hbm [shape: bf16[2,512], index: 0, kind: input, shape index: {}]   ;;  %s4069_s1 = inlined_call_operand.hbm [shape: bf16[2,1200], index: 1, kind: input, shape index: {}]   ;;  %s4070_s2 = inlined_call_operand.hbm [shape: bf16[2,368], index: 2, kind: input, shape index: {}]   ;;  %s4071_s3 = inlined_call_operand.hbm [shape: bf16[2864,256], index: 3, kind: input, shape index: {}]   ;;  %s4072_s4 = inlined_call_operand.hbm [shape: f32[2,256], index: 4, kind: output, shape index: {}]  }
   0x1   :  { %10 = vsyncpa [#allocation6], 0 }
   0x2   :  { %11 = vsyncpa [#allocation9], 0 }
   0x3   :  { %12 = vsyncpa [#allocation4], 0  ;;  %s3947_s15 = smov [#allocation5]   ;;  %s3948_s17 = smov [#allocation2]  }
   0x4   :  { %s29_s16 = sshll.u32 %s3947_s15, 4  ;;  %s19_s18 = sshll.u32 %s3948_s17, 4  ;;  %s30_s16 = int_to_ptr.vmem [resolvable:$true] %s29_s16  ;;  %s20_s18 = int_to_ptr.vmem [resolvable:$true] %s19_s18 }
   0x5   :  { %s3847_s19 = scalar_lea.vmem %s30_s16, 160  ;;  %p3852_p1 = scmp.lt.s32.totalorder %s30_s16, %s30_s16 }
   0x6   :  { %p3848_p0 = scmp.ne.s32.totalorder %s30_s16, %s3847_s19  ;;  %p3853_p2 = scmp.lt.s32.totalorder %s3847_s19, %s3847_s19 }
   0x8   :  { %p3854_p3 = por %p3853_p2, %p3852_p1 }
   0xa   :  { %p3855_p4 = pnand %p3854_p3, %p3848_p0 }
   0xc   :  { %3858 = shalt.err (!%p3855_p4)
}
   0xd   :  { %32 = dma.hbm_to_vmem [thread:$0]  %s4069_s1, 160, %s30_s16, [#allocation6]  }
   0xe   :  { %s3867_s22 = scalar_lea.vmem %s20_s18, 64  ;;  %p3872_p6 = scmp.lt.s32.totalorder %s20_s18, %s20_s18 }
   0xf   :  { %p3868_p5 = scmp.ne.s32.totalorder %s20_s18, %s3867_s22  ;;  %p3873_p7 = scmp.lt.s32.totalorder %s3867_s22, %s3867_s22 }
  0x11   :  { %p3874_p8 = por %p3873_p7, %p3872_p6 }
  0x13   :  { %p3875_p9 = pnand %p3874_p8, %p3868_p5 }
  0x15   :  { %3878 = shalt.err (!%p3875_p9)
}
  0x16   :  { %22 = dma.hbm_to_vmem [thread:$0]  %s4068_s0, 64, %s20_s18, [#allocation3]  }
  0x17   :  { %s3949_s25 = smov [#allocation7]   ;;  %s3950_s27 = smov [#allocation8]  }
  0x18   :  { %s39_s26 = sshll.u32 %s3949_s25, 4  ;;  %s48_s28 = sshll.u32 %s3950_s27, 4  ;;  %s40_s26 = int_to_ptr.vmem [resolvable:$true] %s39_s26  ;;  %s49_s28 = int_to_ptr.vmem [resolvable:$true] %s48_s28 }
  0x19   :  { %s3887_s29 = scalar_lea.vmem %s40_s26, 48  ;;  %s3891_s1 = scalar_lea.vmem %s40_s26, 64 }
  0x1a   :  { %p3888_p10 = scmp.ne.s32.totalorder %s40_s26, %s3887_s29  ;;  %p3892_p11 = scmp.lt.s32.totalorder %s40_s26, %s40_s26 }
  0x1b   :  { %p3893_p12 = scmp.lt.s32.totalorder %s3891_s1, %s3887_s29 }
  0x1d   :  { %p3894_p13 = por %p3893_p12, %p3892_p11 }
  0x1f   :  { %p3895_p0 = pnand %p3894_p13, %p3888_p10 }
  0x21   :  { %3898 = shalt.err (!%p3895_p0)
}
  0x22   :  { %42 = dma.hbm_to_vmem [thread:$0]  %s4070_s2, 48, %s40_s26, [#allocation6]  }
  0x23   :  { %s3907_s6 = scalar_lea.vmem %s49_s28, 45824  ;;  %p3912_p2 = scmp.lt.s32.totalorder %s49_s28, %s49_s28 }
  0x24   :  { %p3908_p1 = scmp.ne.s32.totalorder %s49_s28, %s3907_s6  ;;  %p3913_p3 = scmp.lt.s32.totalorder %s3907_s6, %s3907_s6 }
  0x26   :  { %p3914_p4 = por %p3913_p3, %p3912_p2 }
  0x28   :  { %p3915_p5 = pnand %p3914_p4, %p3908_p1 }
  0x2a   :  { %3918 = shalt.err (!%p3915_p5)
}
  0x2b   :  { %s3951_s0 = smov 128   ;;  %s3952_s7 = smov 8  }
  0x2c   :  { %54 = dma.hbm_to_vmem [thread:$0]  %s4071_s3, 45824, %s49_s28, [#allocation9], %s3951_s0, %s3951_s0, %s3952_s7  }
  0x2d   :  { %3939 = dma.done.wait [#allocation3], 64  }
  0x2e   :  { %3940 = vsyncadd [#allocation3], 4294967232 }
  0x2f   :  { %3941 = dma.done.wait [#allocation6], 208  }
  0x30   :  { %3942 = vsyncadd [#allocation6], 4294967088 }
  0x31   :  { %3943 = dma.done.wait [#allocation9], 45824  }
  0x32   :  { %3944 = vsyncadd [#allocation9], 4294921472  ;;  %v3304_v0 = vld [vmem:[#allocation8 + $0x74] ss:$8 sps:$4 sm:$0xff]   ;;  %v3306_v1 = vld [vmem:[#allocation8 + $0x70] ss:$8 sps:$4 sm:$0xff]   ;;  %v231_v35 = vlaneseq }
  0x33   :  { %1075 = vmatprep.subr.bf16.mxu0 %v3304_v0  ;;  %v3307_v2 = vld [vmem:[#allocation8 + $0x174] ss:$8 sps:$4 sm:$0xff]   ;;  %v3309_v3 = vld [vmem:[#allocation8 + $0x170] ss:$8 sps:$4 sm:$0xff]   ;;  %v3310_v4 = vld [vmem:[#allocation8 + $0x64] ss:$8 sps:$4 sm:$0xff]  }
  0x34   :  { %1076 = vmatpush1.bf16.msra.mxu0 %v3306_v1  ;;  %v3312_v5 = vld [vmem:[#allocation8 + $0x60] ss:$8 sps:$4 sm:$0xff]   ;;  %1116 = vmatprep.subr.bf16.mxu1 %v3307_v2  ;;  %v3313_v6 = vld [vmem:[#allocation8 + $0x164] ss:$8 sps:$4 sm:$0xff]   ;;  %v3316_v8 = vld [vmem:[#allocation8 + $0x54] ss:$8 sps:$4 sm:$0xff]  }
  0x35   :  { %1117 = vmatpush1.bf16.msra.mxu1 %v3309_v3  ;;  %1077 = vmatprep.subr.bf16.mxu0 %v3310_v4  ;;  %v3315_v7 = vld [vmem:[#allocation8 + $0x160] ss:$8 sps:$4 sm:$0xff]   ;;  %v3318_v9 = vld [vmem:[#allocation8 + $0x50] ss:$8 sps:$4 sm:$0xff]   ;;  %v3319_v10 = vld [vmem:[#allocation8 + $0x154] ss:$8 sps:$4 sm:$0xff]  }
  0x36   :  { %1118 = vmatprep.subr.bf16.mxu1 %v3313_v6  ;;  %v3322_v11 = vld [vmem:[#allocation8 + $0x44] ss:$8 sps:$4 sm:$0xff]   ;;  %v3321_v12 = vld [vmem:[#allocation8 + $0x150] ss:$8 sps:$4 sm:$0xff]   ;;  %v3324_v14 = vld [vmem:[#allocation8 + $0x40] ss:$8 sps:$4 sm:$0xff]  }
  0x37   :  { %v3325_v13 = vld [vmem:[#allocation8 + $0x144] ss:$8 sps:$4 sm:$0xff]   ;;  %v3328_v15 = vld [vmem:[#allocation8 + $0x34] ss:$8 sps:$4 sm:$0xff]   ;;  %v3327_v16 = vld [vmem:[#allocation8 + $0x140] ss:$8 sps:$4 sm:$0xff]  }
  0x38   :  { %1078 = vmatpush1.bf16.msra.mxu0 %v3312_v5  ;;  %v3331_v17 = vld [vmem:[#allocation8 + $0x134] ss:$8 sps:$4 sm:$0xff]   ;;  %v3330_v18 = vld [vmem:[#allocation8 + $0x30] ss:$8 sps:$4 sm:$0xff]   ;;  %v3334_v19 = vld [vmem:[#allocation8 + $0x24] ss:$8 sps:$4 sm:$0xff]  }
  0x39   :  { %1079 = vmatprep.subr.bf16.mxu0 %v3316_v8  ;;  %1119 = vmatpush1.bf16.msra.mxu1 %v3315_v7  ;;  %v3333_v20 = vld [vmem:[#allocation8 + $0x130] ss:$8 sps:$4 sm:$0xff]   ;;  %v3337_v21 = vld [vmem:[#allocation8 + $0x124] ss:$8 sps:$4 sm:$0xff]   ;;  %v3336_v22 = vld [vmem:[#allocation8 + $0x20] ss:$8 sps:$4 sm:$0xff]  }
  0x3a   :  { %1120 = vmatprep.subr.bf16.mxu1 %v3319_v10  ;;  %v3340_v23 = vld [vmem:[#allocation8 + $0x14] ss:$8 sps:$4 sm:$0xff]   ;;  %v3339_v24 = vld [vmem:[#allocation8 + $0x120] ss:$8 sps:$4 sm:$0xff]   ;;  %v3342_v26 = vld [vmem:[#allocation8 + $0x10] ss:$8 sps:$4 sm:$0xff]  }
  0x3b   :  { %v3343_v25 = vld [vmem:[#allocation8 + $0x114] ss:$8 sps:$4 sm:$0xff]   ;;  %v3346_v27 = vld [vmem:[#allocation8 + $0x4] ss:$8 sps:$4 sm:$0xff]   ;;  %v3345_v28 = vld [vmem:[#allocation8 + $0x110] ss:$8 sps:$4 sm:$0xff]  }
  0x3c   :  { %1080 = vmatpush1.bf16.msra.mxu0 %v3318_v9  ;;  %v3349_v29 = vld [vmem:[#allocation8 + $0x104] ss:$8 sps:$4 sm:$0xff]   ;;  %v3348_v30 = vld [vmem:[#allocation8] ss:$8 sps:$4 sm:$0xff]   ;;  %v3352_v31 = vld [vmem:[#allocation8 + $0xf4] ss:$8 sps:$4 sm:$0xff]  }
  0x3d   :  { %1081 = vmatprep.subr.bf16.mxu0 %v3322_v11  ;;  %1121 = vmatpush1.bf16.msra.mxu1 %v3321_v12  ;;  %v3351_v32 = vld [vmem:[#allocation8 + $0x100] ss:$8 sps:$4 sm:$0xff]   ;;  %v3355_v33 = vld [vmem:[#allocation8 + $0x1f4] ss:$8 sps:$4 sm:$0xff]   ;;  %v3354_v34 = vld [vmem:[#allocation8 + $0xf0] ss:$8 sps:$4 sm:$0xff]  }
  0x3e   :  { %1122 = vmatprep.subr.bf16.mxu1 %v3325_v13  ;;  %v3953_v36 = vmov 1966171168   ;;  %v3358_v38 = vld [vmem:[#allocation8 + $0xe4] ss:$8 sps:$4 sm:$0xff]   ;;  %v3357_v39 = vld [vmem:[#allocation8 + $0x1f0] ss:$8 sps:$4 sm:$0xff]  }
  0x3f   :  { %v243_v37 = vunpack.c.l.s4 %v3953_v36  ;;  %v3361_v40 = vld [vmem:[#allocation8 + $0x1e4] ss:$8 sps:$4 sm:$0xff]   ;;  %v3360_v41 = vld [vmem:[#allocation8 + $0xe0] ss:$8 sps:$4 sm:$0xff]   ;;  %v3993_v42 = vshrl.u32 %v231_v35, 7  ;;  %v79_v52 = vld [vmem:[#allocation5] sm:$0xff] }
  0x40   :  { %1082 = vmatpush1.bf16.msra.mxu0 %v3324_v14  ;;  %v3364_v44 = vld [vmem:[#allocation8 + $0xd4] ss:$8 sps:$4 sm:$0xff]   ;;  %v3363_v45 = vld [vmem:[#allocation8 + $0x1e0] ss:$8 sps:$4 sm:$0xff]   ;;  %v3366_v47 = vld [vmem:[#allocation8 + $0xd0] ss:$8 sps:$4 sm:$0xff]   ;;  %v241_v63 = vcombine.high %v79_v52, %v79_v52 }
  0x41   :  { %1083 = vmatprep.subr.bf16.mxu0 %v3328_v15  ;;  %1123 = vmatpush1.bf16.msra.mxu1 %v3327_v16  ;;  %v244_v43 = vunpack.c.0.s8 %v243_v37  ;;  %v3367_v46 = vld [vmem:[#allocation8 + $0x1d4] ss:$8 sps:$4 sm:$0xff]   ;;  %v3370_v49 = vld [vmem:[#allocation8 + $0xc4] ss:$8 sps:$4 sm:$0xff]   ;;  %v3369_v50 = vld [vmem:[#allocation8 + $0x1d0] ss:$8 sps:$4 sm:$0xff]  }
  0x42   :  { %1124 = vmatprep.subr.bf16.mxu1 %v3331_v17  ;;  %v3373_v51 = vld [vmem:[#allocation8 + $0x1c4] ss:$8 sps:$4 sm:$0xff]   ;;  %v3372_v53 = vld [vmem:[#allocation8 + $0xc0] ss:$8 sps:$4 sm:$0xff]   ;;  %v3376_v55 = vld [vmem:[#allocation8 + $0xb4] ss:$8 sps:$4 sm:$0xff]  }
  0x43   :  { %v3996_v48 = vsub.s32 %v244_v43, %v3993_v42  ;;  %v3375_v56 = vld [vmem:[#allocation8 + $0x1c0] ss:$8 sps:$4 sm:$0xff]   ;;  %v3379_v58 = vld [vmem:[#allocation8 + $0x1b4] ss:$8 sps:$4 sm:$0xff]   ;;  %v3378_v59 = vld [vmem:[#allocation8 + $0xb0] ss:$8 sps:$4 sm:$0xff]  }
  0x44   :  { %1084 = vmatpush1.bf16.msra.mxu0 %v3330_v18  ;;  %v3382_v61 = vld [vmem:[#allocation8 + $0xa4] ss:$8 sps:$4 sm:$0xff]   ;;  %v3381_v62 = vld [vmem:[#allocation8 + $0x1b0] ss:$8 sps:$4 sm:$0xff]   ;;  %v3384_v2 = vld [vmem:[#allocation8 + $0xa0] ss:$8 sps:$4 sm:$0xff]  }
  0x45   :  { %1085 = vmatprep.subr.bf16.mxu0 %v3334_v19  ;;  %1125 = vmatpush1.bf16.msra.mxu1 %v3333_v20  ;;  %v248_v54 = vrot.slane %v79_v52, %v3996_v48  ;;  %v3385_v1 = vld [vmem:[#allocation8 + $0x1a4] ss:$8 sps:$4 sm:$0xff]   ;;  %v3388_v3 = vld [vmem:[#allocation8 + $0x94] ss:$8 sps:$4 sm:$0xff]   ;;  %v3387_v4 = vld [vmem:[#allocation8 + $0x1a0] ss:$8 sps:$4 sm:$0xff]   ;;  %v4001_v5 = vrot.slane %v241_v63, %v3996_v48 }
  0x46   :  { %1126 = vmatprep.subr.bf16.mxu1 %v3337_v21  ;;  %v3391_v6 = vld [vmem:[#allocation8 + $0x194] ss:$8 sps:$4 sm:$0xff]   ;;  %v3390_v7 = vld [vmem:[#allocation8 + $0x90] ss:$8 sps:$4 sm:$0xff]   ;;  %v3394_v8 = vld [vmem:[#allocation8 + $0x84] ss:$8 sps:$4 sm:$0xff]  }
  0x47   :  { %v256_v57 = vcombine.high %v248_v54, %v248_v54  ;;  %v3393_v9 = vld [vmem:[#allocation8 + $0x190] ss:$8 sps:$4 sm:$0xff]   ;;  %v257_v10 = vcombine.high %v4001_v5, %v4001_v5  ;;  %v3397_v11 = vld [vmem:[#allocation8 + $0x184] ss:$8 sps:$4 sm:$0xff]   ;;  %v3396_v12 = vld [vmem:[#allocation8 + $0x80] ss:$8 sps:$4 sm:$0xff]   ;;  %v264_v13 = vrot.slane %v248_v54, %v3996_v48 }
  0x48   :  { %1086 = vmatpush1.bf16.msra.mxu0 %v3336_v22  ;;  %v3403_v14 = vld [vmem:[#allocation8 + $0x274] ss:$8 sps:$4 sm:$0xff]   ;;  %v3400_v15 = vld [vmem:[#allocation8 + $0x180] ss:$8 sps:$4 sm:$0xff]   ;;  %v3401_v18 = vld [vmem:[#allocation8 + $0x270] ss:$8 sps:$4 sm:$0xff]  }
  0x49   :  { %1087 = vmatprep.subr.bf16.mxu0 %v3340_v23  ;;  %1127 = vmatpush1.bf16.msra.mxu1 %v3339_v24  ;;  %v278_v60 = vrot.slane %v256_v57, %v3996_v48  ;;  %v285_v16 = vrot.slane %v257_v10, %v3996_v48  ;;  %v3406_v17 = vld [vmem:[#allocation8 + $0x374] ss:$8 sps:$4 sm:$0xff]   ;;  %v286_v19 = vcombine.high %v264_v13, %v264_v13  ;;  %v3409_v20 = vld [vmem:[#allocation8 + $0x264] ss:$8 sps:$4 sm:$0xff]   ;;  %v3404_v21 = vld [vmem:[#allocation8 + $0x370] ss:$8 sps:$4 sm:$0xff]  }
  0x4a   :  { %1128 = vmatprep.subr.bf16.mxu1 %v3343_v25  ;;  %v3412_v23 = vld [vmem:[#allocation8 + $0x364] ss:$8 sps:$4 sm:$0xff]   ;;  %v3407_v24 = vld [vmem:[#allocation8 + $0x260] ss:$8 sps:$4 sm:$0xff]   ;;  %v3415_v25 = vld [vmem:[#allocation8 + $0x254] ss:$8 sps:$4 sm:$0xff]  }
  0x4b   :  { %1107 = vmatprep.mubr.bf16.mxu0 %v278_v60  ;;  %v288_v0 = vcombine.high %v278_v60, %v278_v60  ;;  %v289_v22 = vcombine.high %v285_v16, %v285_v16  ;;  %v3430_v35 = vld [vmem:[#allocation8 + $0x334] ss:$8 sps:$4 sm:$0xff]   ;;  %v3425_v36 = vld [vmem:[#allocation8 + $0x230] ss:$8 sps:$4 sm:$0xff]   ;;  %v3433_v37 = vld [vmem:[#allocation8 + $0x224] ss:$8 sps:$4 sm:$0xff]  }
  0x4c   :  { %1088 = vmatpush1.bf16.msra.mxu0 %v3342_v26  ;;  %v3410_v26 = vld [vmem:[#allocation8 + $0x360] ss:$8 sps:$4 sm:$0xff]   ;;  %v3449_v54 = vld [vmem:[#allocation8 + $0x2f0] ss:$8 sps:$4 sm:$0xff]   ;;  %v3460_v57 = vld [vmem:[#allocation8 + $0x3e4] ss:$8 sps:$4 sm:$0xff]  }
  0x4d   :  { %1089 = vmatprep.subr.bf16.mxu0 %v3346_v27  ;;  %1129 = vmatpush1.bf16.msra.mxu1 %v3345_v28  ;;  %v3418_v27 = vld [vmem:[#allocation8 + $0x354] ss:$8 sps:$4 sm:$0xff]   ;;  %v3413_v28 = vld [vmem:[#allocation8 + $0x250] ss:$8 sps:$4 sm:$0xff]   ;;  %v3434_v43 = vld [vmem:[#allocation8 + $0x320] ss:$8 sps:$4 sm:$0xff]  }
  0x4e   :  { %1130 = vmatprep.subr.bf16.mxu1 %v3349_v29  ;;  %1148 = vmatprep.mubr.bf16.mxu1 %v288_v0  ;;  %v3421_v29 = vld [vmem:[#allocation8 + $0x244] ss:$8 sps:$4 sm:$0xff]   ;;  %v3446_v52 = vld [vmem:[#allocation8 + $0x300] ss:$8 sps:$4 sm:$0xff]   ;;  %v3464_v0 = vld [vmem:[#allocation8 + $0x3d0] ss:$8 sps:$4 sm:$0xff]  }
  0x4f   :  { %v3458_v60 = vld [vmem:[#allocation8 + $0x3e0] ss:$8 sps:$4 sm:$0xff]   ;;  %v3469_v63 = vld [vmem:[#allocation8 + $0x2c4] ss:$8 sps:$4 sm:$0xff]   ;;  %vm1071_vm0 = vcmask 392192   ;;  %vm1595_vm1 = vcmask 916480  }
  0x50   :  { %1090 = vmatpush1.bf16.msra.mxu0 %v3348_v30  ;;  %v3416_v30 = vld [vmem:[#allocation8 + $0x350] ss:$8 sps:$4 sm:$0xff]   ;;  %v3484_v10 = vld [vmem:[#allocation8 + $0x3a4] ss:$8 sps:$4 sm:$0xff]   ;;  %s3955_s2 = smov [#allocation10]  }
  0x51   :  { %1091 = vmatprep.subr.bf16.mxu0 %v3352_v31  ;;  %1131 = vmatpush1.bf16.msra.mxu1 %v3351_v32  ;;  %v3424_v31 = vld [vmem:[#allocation8 + $0x344] ss:$8 sps:$4 sm:$0xff]   ;;  %v3419_v32 = vld [vmem:[#allocation8 + $0x240] ss:$8 sps:$4 sm:$0xff]   ;;  %s2922_s3 = sshll.u32 %s3955_s2, 4  ;;  %s2923_s3 = int_to_ptr.vmem [resolvable:$true] %s2922_s3 }
  0x52   :  { %1132 = vmatprep.subr.bf16.mxu1 %v3355_v33  ;;  %v3427_v33 = vld [vmem:[#allocation8 + $0x234] ss:$8 sps:$4 sm:$0xff]   ;;  %s3919_s10 = scalar_lea.vmem %s2923_s3, 64  ;;  %p3924_p7 = scmp.lt.s32.totalorder %s2923_s3, %s2923_s3 }
  0x53   :  { %p3920_p6 = scmp.ne.s32.totalorder %s2923_s3, %s3919_s10  ;;  %p3925_p8 = scmp.lt.s32.totalorder %s3919_s10, %s3919_s10 }
  0x54   :  { %1092 = vmatpush2.bf16.msra.mxu0 %v3354_v34  ;;  %v3422_v34 = vld [vmem:[#allocation8 + $0x340] ss:$8 sps:$4 sm:$0xff]  }
  0x55   :  { %1093 = vmatprep.subr.bf16.mxu0 %v3358_v38  ;;  %1133 = vmatpush2.bf16.msra.mxu1 %v3357_v39  ;;  %v3428_v38 = vld [vmem:[#allocation8 + $0x330] ss:$8 sps:$4 sm:$0xff]   ;;  %v3436_v39 = vld [vmem:[#allocation8 + $0x324] ss:$8 sps:$4 sm:$0xff]   ;;  %p3926_p9 = por %p3925_p8, %p3924_p7 }
  0x56   :  { %1134 = vmatprep.subr.bf16.mxu1 %v3361_v40  ;;  %v3431_v40 = vld [vmem:[#allocation8 + $0x220] ss:$8 sps:$4 sm:$0xff]  }
  0x57   :  { %p3927_p10 = pnand %p3926_p9, %p3920_p6 }
  0x58   :  { %1094 = vmatpush2.bf16.msra.mxu0 %v3360_v41  ;;  %v3439_v41 = vld [vmem:[#allocation8 + $0x214] ss:$8 sps:$4 sm:$0xff]  }
  0x59   :  { %1095 = vmatprep.subr.bf16.mxu0 %v3364_v44  ;;  %1135 = vmatpush2.bf16.msra.mxu1 %v3363_v45  ;;  %v3442_v44 = vld [vmem:[#allocation8 + $0x314] ss:$8 sps:$4 sm:$0xff]   ;;  %v3437_v45 = vld [vmem:[#allocation8 + $0x210] ss:$8 sps:$4 sm:$0xff]  }
  0x5a   :  { %1136 = vmatprep.subr.bf16.mxu1 %v3367_v46  ;;  %v3445_v46 = vld [vmem:[#allocation8 + $0x204] ss:$8 sps:$4 sm:$0xff]  }
  0x5c   :  { %1096 = vmatpush2.bf16.msra.mxu0 %v3366_v47  ;;  %v3440_v47 = vld [vmem:[#allocation8 + $0x310] ss:$8 sps:$4 sm:$0xff]  }
  0x5d   :  { %1097 = vmatprep.subr.bf16.mxu0 %v3370_v49  ;;  %1137 = vmatpush2.bf16.msra.mxu1 %v3369_v50  ;;  %v3448_v49 = vld [vmem:[#allocation8 + $0x304] ss:$8 sps:$4 sm:$0xff]   ;;  %v3443_v50 = vld [vmem:[#allocation8 + $0x200] ss:$8 sps:$4 sm:$0xff]  }
  0x5e   :  { %1138 = vmatprep.subr.bf16.mxu1 %v3373_v51  ;;  %v3451_v51 = vld [vmem:[#allocation8 + $0x2f4] ss:$8 sps:$4 sm:$0xff]  }
  0x60   :  { %1098 = vmatpush2.bf16.msra.mxu0 %v3372_v53  ;;  %v3454_v53 = vld [vmem:[#allocation8 + $0x3f4] ss:$8 sps:$4 sm:$0xff]  }
  0x61   :  { %1099 = vmatprep.subr.bf16.mxu0 %v3376_v55  ;;  %1139 = vmatpush2.bf16.msra.mxu1 %v3375_v56  ;;  %v3457_v55 = vld [vmem:[#allocation8 + $0x2e4] ss:$8 sps:$4 sm:$0xff]   ;;  %v3452_v56 = vld [vmem:[#allocation8 + $0x3f0] ss:$8 sps:$4 sm:$0xff]  }
  0x62   :  { %1140 = vmatprep.subr.bf16.mxu1 %v3379_v58  ;;  %v3455_v58 = vld [vmem:[#allocation8 + $0x2e0] ss:$8 sps:$4 sm:$0xff]  }
  0x64   :  { %1100 = vmatpush2.bf16.msra.mxu0 %v3378_v59  ;;  %v3463_v59 = vld [vmem:[#allocation8 + $0x2d4] ss:$8 sps:$4 sm:$0xff]  }
  0x65   :  { %1101 = vmatprep.subr.bf16.mxu0 %v3382_v61  ;;  %1141 = vmatpush2.bf16.msra.mxu1 %v3381_v62  ;;  %v3466_v61 = vld [vmem:[#allocation8 + $0x3d4] ss:$8 sps:$4 sm:$0xff]   ;;  %v3461_v62 = vld [vmem:[#allocation8 + $0x2d0] ss:$8 sps:$4 sm:$0xff]  }
  0x66   :  { %1142 = vmatprep.subr.bf16.mxu1 %v3385_v1  ;;  %v3472_v1 = vld [vmem:[#allocation8 + $0x3c4] ss:$8 sps:$4 sm:$0xff]  }
  0x68   :  { %1102 = vmatpush2.bf16.msra.mxu0 %v3384_v2  ;;  %v3467_v2 = vld [vmem:[#allocation8 + $0x2c0] ss:$8 sps:$4 sm:$0xff]  }
  0x69   :  { %1103 = vmatprep.subr.bf16.mxu0 %v3388_v3  ;;  %1143 = vmatpush2.bf16.msra.mxu1 %v3387_v4  ;;  %v3475_v3 = vld [vmem:[#allocation8 + $0x2b4] ss:$8 sps:$4 sm:$0xff]   ;;  %v3470_v4 = vld [vmem:[#allocation8 + $0x3c0] ss:$8 sps:$4 sm:$0xff]  }
  0x6a   :  { %1144 = vmatprep.subr.bf16.mxu1 %v3391_v6  ;;  %v3478_v6 = vld [vmem:[#allocation8 + $0x3b4] ss:$8 sps:$4 sm:$0xff]  }
  0x6c   :  { %1104 = vmatpush2.bf16.msra.mxu0 %v3390_v7  ;;  %v3473_v7 = vld [vmem:[#allocation8 + $0x2b0] ss:$8 sps:$4 sm:$0xff]  }
  0x6d   :  { %1105 = vmatprep.subr.bf16.mxu0 %v3394_v8  ;;  %1145 = vmatpush2.bf16.msra.mxu1 %v3393_v9  ;;  %v3481_v8 = vld [vmem:[#allocation8 + $0x2a4] ss:$8 sps:$4 sm:$0xff]   ;;  %v3476_v9 = vld [vmem:[#allocation8 + $0x3b0] ss:$8 sps:$4 sm:$0xff]  }
  0x6e   :  { %1146 = vmatprep.subr.bf16.mxu1 %v3397_v11  ;;  %v3479_v11 = vld [vmem:[#allocation8 + $0x2a0] ss:$8 sps:$4 sm:$0xff]  }
  0x70   :  { %1106 = vmatpush2.bf16.msra.mxu0 %v3396_v12  ;;  %v3487_v12 = vld [vmem:[#allocation8 + $0x294] ss:$8 sps:$4 sm:$0xff]  }
  0x71   :  { %1157 = vmatprep.subr.bf16.mxu0 %v3403_v14  ;;  %1147 = vmatpush2.bf16.msra.mxu1 %v3400_v15  ;;  %v3490_v14 = vld [vmem:[#allocation8 + $0x394] ss:$8 sps:$4 sm:$0xff]   ;;  %v3485_v15 = vld [vmem:[#allocation8 + $0x290] ss:$8 sps:$4 sm:$0xff]  }
  0x72   :  { %1198 = vmatprep.subr.bf16.mxu1 %v3406_v17  ;;  %v4007_v17 = vld.sshfl [vmem:[#allocation5 + $0x8] sm:$0x11 pattern:$0x75316420] }
  0x73   :  { %1108 = vmatmul.mubr.bf16.vlgmr.msra.gmra.mxu0 %v264_v13  ;;  %v3482_v13 = vld [vmem:[#allocation8 + $0x3a0] ss:$8 sps:$4 sm:$0xff]  }
  0x74   :  { %1158 = vmatpush1.bf16.msra.mxu0 %v3401_v18  ;;  %1189 = vmatprep.mubr.bf16.mxu0 %v285_v16  ;;  %v3493_v16 = vld [vmem:[#allocation8 + $0x284] ss:$8 sps:$4 sm:$0xff]   ;;  %v3488_v18 = vld [vmem:[#allocation8 + $0x390] ss:$8 sps:$4 sm:$0xff]  }
  0x75   :  { %1149 = vmatmul.mubr.bf16.vlgmr.msra.gmra.mxu1 %v286_v19  ;;  %1159 = vmatprep.subr.bf16.mxu0 %v3409_v20  ;;  %v3496_v19 = vld [vmem:[#allocation8 + $0x384] ss:$8 sps:$4 sm:$0xff]   ;;  %v3491_v20 = vld [vmem:[#allocation8 + $0x280] ss:$8 sps:$4 sm:$0xff]  }
  0x76   :  { %1199 = vmatpush1.bf16.msra.mxu1 %v3404_v21  ;;  %1230 = vmatprep.mubr.bf16.mxu1 %v289_v22  ;;  %v297_v21 = vcombine.high %v4007_v17, %v4007_v17  ;;  %v271_v22 = vrot.slane %v4001_v5, %v3996_v48  ;;  %v3500_v5 = vld [vmem:[#allocation8 + $0x460] ss:$8 sps:$4 sm:$0xff]  }
  0x77   :  { %1200 = vmatprep.subr.bf16.mxu1 %v3412_v23  ;;  %v3499_v23 = vld [vmem:[#allocation8 + $0x474] ss:$8 sps:$4 sm:$0xff]  }
  0x78   :  { %1160 = vmatpush1.bf16.msra.mxu0 %v3407_v24  ;;  %v3494_v24 = vld [vmem:[#allocation8 + $0x380] ss:$8 sps:$4 sm:$0xff]  }
  0x79   :  { %1161 = vmatprep.subr.bf16.mxu0 %v3415_v25  ;;  %v3526_v25 = vld [vmem:[#allocation8 + $0x524] ss:$8 sps:$4 sm:$0xff]  }
  0x7a   :  { %1201 = vmatpush1.bf16.msra.mxu1 %v3410_v26  ;;  %v3497_v26 = vld [vmem:[#allocation8 + $0x470] ss:$8 sps:$4 sm:$0xff]  }
  0x7b   :  { %1202 = vmatprep.subr.bf16.mxu1 %v3418_v27  ;;  %v311_v27 = vrot.slane %v297_v21, %v3996_v48  ;;  %v3575_v21 = vld [vmem:[#allocation8 + $0x560] ss:$8 sps:$4 sm:$0xff]  }
  0x7c   :  { %1162 = vmatpush1.bf16.msra.mxu0 %v3413_v28  ;;  %v287_v28 = vcombine.high %v271_v22, %v271_v22 }
  0x7d   :  { %1163 = vmatprep.subr.bf16.mxu0 %v3421_v29  ;;  %v3502_v29 = vld [vmem:[#allocation8 + $0x464] ss:$8 sps:$4 sm:$0xff]  }
  0x7e   :  { %1203 = vmatpush1.bf16.msra.mxu1 %v3416_v30  ;;  %v3524_v30 = vld [vmem:[#allocation8 + $0x520] ss:$8 sps:$4 sm:$0xff]  }
  0x7f   :  { %1204 = vmatprep.subr.bf16.mxu1 %v3424_v31  ;;  %v3532_v31 = vld [vmem:[#allocation8 + $0x514] ss:$8 sps:$4 sm:$0xff]  }
  0x80   :  { %1164 = vmatpush1.bf16.msra.mxu0 %v3419_v32  ;;  %v3505_v32 = vld [vmem:[#allocation8 + $0x454] ss:$8 sps:$4 sm:$0xff]  }
  0x81   :  { %1165 = vmatprep.subr.bf16.mxu0 %v3427_v33  ;;  %v3530_v33 = vld [vmem:[#allocation8 + $0x510] ss:$8 sps:$4 sm:$0xff]  }
  0x82   :  { %1205 = vmatpush1.bf16.msra.mxu1 %v3422_v34  ;;  %v3538_v34 = vld [vmem:[#allocation8 + $0x504] ss:$8 sps:$4 sm:$0xff]  }
  0x83   :  { %1206 = vmatprep.subr.bf16.mxu1 %v3430_v35  ;;  %v4014_v35 = vld.sshfl [vmem:[#allocation7] sm:$0x13 pattern:$0x75316420] }
  0x84   :  { %1166 = vmatpush1.bf16.msra.mxu0 %v3425_v36  ;;  %v3503_v36 = vld [vmem:[#allocation8 + $0x450] ss:$8 sps:$4 sm:$0xff]  }
  0x85   :  { %1167 = vmatprep.subr.bf16.mxu0 %v3433_v37  ;;  %v1347_v37 = vcombine.high %v4014_v35, %v4014_v35 }
  0x86   :  { %1207 = vmatpush1.bf16.msra.mxu1 %v3428_v38  ;;  %v3508_v38 = vld [vmem:[#allocation8 + $0x444] ss:$8 sps:$4 sm:$0xff]  }
  0x87   :  { %1208 = vmatprep.subr.bf16.mxu1 %v3436_v39  ;;  %v3536_v39 = vld [vmem:[#allocation8 + $0x500] ss:$8 sps:$4 sm:$0xff]  }
  0x88   :  { %1168 = vmatpush1.bf16.msra.mxu0 %v3431_v40  ;;  %v1361_v40 = vrot.slane %v1347_v37, %v3996_v48  ;;  %v1354_v37 = vrot.slane %v4014_v35, %v3996_v48  ;;  %v3617_v35 = vld [vmem:[#allocation8 + $0x870] ss:$8 sps:$4 sm:$0xff]  }
  0x89   :  { %1169 = vmatprep.subr.bf16.mxu0 %v3439_v41  ;;  %v3541_v41 = vld [vmem:[#allocation8 + $0x4f4] ss:$8 sps:$4 sm:$0xff]  }
  0x8a   :  { %1209 = vmatpush1.bf16.msra.mxu1 %v3434_v43  ;;  %v3506_v43 = vld [vmem:[#allocation8 + $0x440] ss:$8 sps:$4 sm:$0xff]  }
  0x8b   :  { %1210 = vmatprep.subr.bf16.mxu1 %v3442_v44  ;;  %v3511_v44 = vld [vmem:[#allocation8 + $0x434] ss:$8 sps:$4 sm:$0xff]  }
  0x8c   :  { %1170 = vmatpush1.bf16.msra.mxu0 %v3437_v45  ;;  %v3539_v45 = vld [vmem:[#allocation8 + $0x4f0] ss:$8 sps:$4 sm:$0xff]  }
  0x8d   :  { %1171 = vmatprep.subr.bf16.mxu0 %v3445_v46  ;;  %v3509_v46 = vld [vmem:[#allocation8 + $0x430] ss:$8 sps:$4 sm:$0xff]  }
  0x8e   :  { %1211 = vmatpush1.bf16.msra.mxu1 %v3440_v47  ;;  %v3514_v47 = vld [vmem:[#allocation8 + $0x424] ss:$8 sps:$4 sm:$0xff]  }
  0x8f   :  { %1212 = vmatprep.subr.bf16.mxu1 %v3448_v49  ;;  %v3544_v49 = vld [vmem:[#allocation8 + $0x4e4] ss:$8 sps:$4 sm:$0xff]  }
  0x90   :  { %1172 = vmatpush1.bf16.msra.mxu0 %v3443_v50  ;;  %v3542_v50 = vld [vmem:[#allocation8 + $0x4e0] ss:$8 sps:$4 sm:$0xff]  }
  0x91   :  { %1173 = vmatprep.subr.bf16.mxu0 %v3451_v51  ;;  %v3547_v51 = vld [vmem:[#allocation8 + $0x4d4] ss:$8 sps:$4 sm:$0xff]  }
  0x92   :  { %1213 = vmatpush1.bf16.msra.mxu1 %v3446_v52  ;;  %v3512_v52 = vld [vmem:[#allocation8 + $0x420] ss:$8 sps:$4 sm:$0xff]  }
  0x93   :  { %1214 = vmatprep.subr.bf16.mxu1 %v3454_v53  ;;  %v3517_v53 = vld [vmem:[#allocation8 + $0x414] ss:$8 sps:$4 sm:$0xff]  }
  0x94   :  { %1174 = vmatpush2.bf16.msra.mxu0 %v3449_v54  ;;  %v3545_v54 = vld [vmem:[#allocation8 + $0x4d0] ss:$8 sps:$4 sm:$0xff]  }
  0x95   :  { %1175 = vmatprep.subr.bf16.mxu0 %v3457_v55  ;;  %v3550_v55 = vld [vmem:[#allocation8 + $0x4c4] ss:$8 sps:$4 sm:$0xff]  }
  0x96   :  { %1215 = vmatpush2.bf16.msra.mxu1 %v3452_v56  ;;  %v3515_v56 = vld [vmem:[#allocation8 + $0x410] ss:$8 sps:$4 sm:$0xff]  }
  0x97   :  { %1216 = vmatprep.subr.bf16.mxu1 %v3460_v57  ;;  %v3520_v57 = vld [vmem:[#allocation8 + $0x404] ss:$8 sps:$4 sm:$0xff]  }
  0x98   :  { %1176 = vmatpush2.bf16.msra.mxu0 %v3455_v58  ;;  %v3548_v58 = vld [vmem:[#allocation8 + $0x4c0] ss:$8 sps:$4 sm:$0xff]  }
  0x99   :  { %1177 = vmatprep.subr.bf16.mxu0 %v3463_v59  ;;  %v3553_v59 = vld [vmem:[#allocation8 + $0x4b4] ss:$8 sps:$4 sm:$0xff]  }
  0x9a   :  { %1217 = vmatpush2.bf16.msra.mxu1 %v3458_v60  ;;  %v3518_v60 = vld [vmem:[#allocation8 + $0x400] ss:$8 sps:$4 sm:$0xff]  }
  0x9b   :  { %1218 = vmatprep.subr.bf16.mxu1 %v3466_v61  ;;  %v3523_v61 = vld [vmem:[#allocation8 + $0x4a4] ss:$8 sps:$4 sm:$0xff]  }
  0x9c   :  { %1178 = vmatpush2.bf16.msra.mxu0 %v3461_v62  ;;  %v3551_v62 = vld [vmem:[#allocation8 + $0x4b0] ss:$8 sps:$4 sm:$0xff]  }
  0x9d   :  { %1179 = vmatprep.subr.bf16.mxu0 %v3469_v63  ;;  %v3556_v63 = vld [vmem:[#allocation8 + $0x5a4] ss:$8 sps:$4 sm:$0xff]  }
  0x9e   :  { %1219 = vmatpush2.bf16.msra.mxu1 %v3464_v0  ;;  %v3521_v0 = vld [vmem:[#allocation8 + $0x4a0] ss:$8 sps:$4 sm:$0xff]  }
  0x9f   :  { %1220 = vmatprep.subr.bf16.mxu1 %v3472_v1  ;;  %v3529_v1 = vld [vmem:[#allocation8 + $0x494] ss:$8 sps:$4 sm:$0xff]  }
  0xa0   :  { %1180 = vmatpush2.bf16.msra.mxu0 %v3467_v2  ;;  %v3554_v2 = vld [vmem:[#allocation8 + $0x5a0] ss:$8 sps:$4 sm:$0xff]  }
  0xa1   :  { %1181 = vmatprep.subr.bf16.mxu0 %v3475_v3  ;;  %v3559_v3 = vld [vmem:[#allocation8 + $0x594] ss:$8 sps:$4 sm:$0xff]  }
  0xa2   :  { %1221 = vmatpush2.bf16.msra.mxu1 %v3470_v4  ;;  %v3527_v4 = vld [vmem:[#allocation8 + $0x490] ss:$8 sps:$4 sm:$0xff]  }
  0xa3   :  { %1222 = vmatprep.subr.bf16.mxu1 %v3478_v6  ;;  %v3535_v6 = vld [vmem:[#allocation8 + $0x484] ss:$8 sps:$4 sm:$0xff]  }
  0xa4   :  { %1182 = vmatpush2.bf16.msra.mxu0 %v3473_v7  ;;  %v3557_v7 = vld [vmem:[#allocation8 + $0x590] ss:$8 sps:$4 sm:$0xff]  }
  0xa5   :  { %1183 = vmatprep.subr.bf16.mxu0 %v3481_v8  ;;  %v3565_v8 = vld [vmem:[#allocation8 + $0x584] ss:$8 sps:$4 sm:$0xff]  }
  0xa6   :  { %1223 = vmatpush2.bf16.msra.mxu1 %v3476_v9  ;;  %v3533_v9 = vld [vmem:[#allocation8 + $0x480] ss:$8 sps:$4 sm:$0xff]  }
  0xa7   :  { %1224 = vmatprep.subr.bf16.mxu1 %v3484_v10  ;;  %v3562_v10 = vld [vmem:[#allocation8 + $0x614] ss:$8 sps:$4 sm:$0xff]  }
  0xa8   :  { %1184 = vmatpush2.bf16.msra.mxu0 %v3479_v11  ;;  %v3563_v11 = vld [vmem:[#allocation8 + $0x580] ss:$8 sps:$4 sm:$0xff]  }
  0xa9   :  { %1185 = vmatprep.subr.bf16.mxu0 %v3487_v12  ;;  %v3571_v12 = vld [vmem:[#allocation8 + $0x574] ss:$8 sps:$4 sm:$0xff]  }
  0xaa   :  { %1225 = vmatpush2.bf16.msra.mxu1 %v3482_v13  ;;  %v3560_v13 = vld [vmem:[#allocation8 + $0x610] ss:$8 sps:$4 sm:$0xff]  }
  0xab   :  { %1226 = vmatprep.subr.bf16.mxu1 %v3490_v14  ;;  %v304_v14 = vrot.slane %v4007_v17, %v3996_v48  ;;  %v3580_v17 = vld [vmem:[#allocation8 + $0x5e4] ss:$8 sps:$4 sm:$0xff]  }
  0xac   :  { %1186 = vmatpush2.bf16.msra.mxu0 %v3485_v15  ;;  %v3568_v15 = vld [vmem:[#allocation8 + $0x604] ss:$8 sps:$4 sm:$0xff]  }
  0xad   :  { %1187 = vmatprep.subr.bf16.mxu0 %v3493_v16  ;;  %v3569_v16 = vld [vmem:[#allocation8 + $0x570] ss:$8 sps:$4 sm:$0xff]  }
  0xae   :  { %1227 = vmatpush2.bf16.msra.mxu1 %v3488_v18  ;;  %v3577_v18 = vld [vmem:[#allocation8 + $0x564] ss:$8 sps:$4 sm:$0xff]  }
  0xaf   :  { %1228 = vmatprep.subr.bf16.mxu1 %v3496_v19  ;;  %v3566_v19 = vld [vmem:[#allocation8 + $0x600] ss:$8 sps:$4 sm:$0xff]  }
  0xb0   :  { %1188 = vmatpush2.bf16.msra.mxu0 %v3491_v20  ;;  %v3574_v20 = vld [vmem:[#allocation8 + $0x5f4] ss:$8 sps:$4 sm:$0xff]  }
  0xb1   :  { %1239 = vmatprep.subr.bf16.mxu0 %v3499_v23  ;;  %v3583_v23 = vld [vmem:[#allocation8 + $0x554] ss:$8 sps:$4 sm:$0xff]  }
  0xb2   :  { %1229 = vmatpush2.bf16.msra.mxu1 %v3494_v24  ;;  %v3572_v24 = vld [vmem:[#allocation8 + $0x5f0] ss:$8 sps:$4 sm:$0xff]  }
  0xb3   :  { %1190 = vmatmul.mubr.bf16.vlgmr.msra.gmra.mxu0 %v271_v22  ;;  %1599 = vmatprep.subr.bf16.mxu1 %v3526_v25  ;;  %v3954_v22 = vmov 0   ;;  %v3581_v25 = vld [vmem:[#allocation8 + $0x550] ss:$8 sps:$4 sm:$0xff]  }
  0xb4   :  { %1240 = vmatpush1.bf16.msra.mxu0 %v3497_v26  ;;  %3084 = vmatprep.mubr.msk.bf16.mxu0 %vm1071_vm0, %v311_v27  ;;  %v3589_v26 = vld [vmem:[#allocation8 + $0x544] ss:$8 sps:$4 sm:$0xff]   ;;  %v3578_v27 = vld [vmem:[#allocation8 + $0x5e0] ss:$8 sps:$4 sm:$0xff]  }
  0xb5   :  { %1231 = vmatmul.mubr.bf16.vlgmr.msra.gmra.mxu1 %v287_v28  ;;  %1241 = vmatprep.subr.bf16.mxu0 %v3502_v29  ;;  %v3586_v28 = vld [vmem:[#allocation8 + $0x5d4] ss:$8 sps:$4 sm:$0xff]   ;;  %v3587_v29 = vld [vmem:[#allocation8 + $0x540] ss:$8 sps:$4 sm:$0xff]  }
  0xb6   :  { %1600 = vmatpush1.bf16.msra.mxu1 %v3524_v30  ;;  %1631 = vmatprep.mubr.bf16.mxu1 %v1361_v40  ;;  %v3595_v30 = vld [vmem:[#allocation8 + $0x534] ss:$8 sps:$4 sm:$0xff]   ;;  %v3596_v40 = vld [vmem:[#allocation8 + $0x5b0] ss:$8 sps:$4 sm:$0xff]  }
  0xb7   :  { %1601 = vmatprep.subr.bf16.mxu1 %v3532_v31  ;;  %v3584_v31 = vld [vmem:[#allocation8 + $0x5d0] ss:$8 sps:$4 sm:$0xff]  }
  0xb8   :  { %1242 = vmatpush1.bf16.msra.mxu0 %v3500_v5  ;;  %v3592_v5 = vld [vmem:[#allocation8 + $0x5c4] ss:$8 sps:$4 sm:$0xff]  }
  0xb9   :  { %1243 = vmatprep.subr.bf16.mxu0 %v3505_v32  ;;  %v3593_v32 = vld [vmem:[#allocation8 + $0x530] ss:$8 sps:$4 sm:$0xff]  }
  0xba   :  { %1602 = vmatpush1.bf16.msra.mxu1 %v3530_v33  ;;  %v3607_v33 = vld [vmem:[#allocation8 + $0x894] ss:$8 sps:$4 sm:$0xff]  }
  0xbb   :  { %1603 = vmatprep.subr.bf16.mxu1 %v3538_v34  ;;  %v3590_v34 = vld [vmem:[#allocation8 + $0x5c0] ss:$8 sps:$4 sm:$0xff]  }
  0xbc   :  { %1244 = vmatpush1.bf16.msra.mxu0 %v3503_v36  ;;  %v3598_v36 = vld [vmem:[#allocation8 + $0x5b4] ss:$8 sps:$4 sm:$0xff]  }
  0xbd   :  { %1245 = vmatprep.subr.bf16.mxu0 %v3508_v38  ;;  %v3605_v38 = vld [vmem:[#allocation8 + $0x890] ss:$8 sps:$4 sm:$0xff]  }
  0xbe   :  { %1604 = vmatpush1.bf16.msra.mxu1 %v3536_v39  ;;  %v3613_v39 = vld [vmem:[#allocation8 + $0x884] ss:$8 sps:$4 sm:$0xff]  }
  0xbf   :  { %1605 = vmatprep.subr.bf16.mxu1 %v3541_v41  ;;  %v3601_v41 = vld [vmem:[#allocation8 + $0x694] ss:$8 sps:$4 sm:$0xff]  }
  0xc0   :  { %1246 = vmatpush1.bf16.msra.mxu0 %v3506_v43  ;;  %v3611_v43 = vld [vmem:[#allocation8 + $0x880] ss:$8 sps:$4 sm:$0xff]  }
  0xc1   :  { %1247 = vmatprep.subr.bf16.mxu0 %v3511_v44  ;;  %v1362_v44 = vcombine.high %v1354_v37, %v1354_v37 }
  0xc2   :  { %1606 = vmatpush1.bf16.msra.mxu1 %v3539_v45  ;;  %v3619_v45 = vld [vmem:[#allocation8 + $0x874] ss:$8 sps:$4 sm:$0xff]  }
  0xc3   :  { %1607 = vmatprep.subr.bf16.mxu1 %v3544_v49  ;;  %v3625_v49 = vld [vmem:[#allocation8 + $0x864] ss:$8 sps:$4 sm:$0xff]  }
  0xc4   :  { %1248 = vmatpush1.bf16.msra.mxu0 %v3509_v46  ;;  %v3599_v46 = vld [vmem:[#allocation8 + $0x690] ss:$8 sps:$4 sm:$0xff]  }
  0xc5   :  { %1249 = vmatprep.subr.bf16.mxu0 %v3514_v47  ;;  %v3604_v47 = vld [vmem:[#allocation8 + $0x684] ss:$8 sps:$4 sm:$0xff]  }
  0xc6   :  { %1608 = vmatpush1.bf16.msra.mxu1 %v3542_v50  ;;  %v3602_v50 = vld [vmem:[#allocation8 + $0x680] ss:$8 sps:$4 sm:$0xff]  }
  0xc7   :  { %1609 = vmatprep.subr.bf16.mxu1 %v3547_v51  ;;  %v3610_v51 = vld [vmem:[#allocation8 + $0x674] ss:$8 sps:$4 sm:$0xff]  }
  0xc8   :  { %1250 = vmatpush1.bf16.msra.mxu0 %v3512_v52  ;;  %v3623_v52 = vld [vmem:[#allocation8 + $0x860] ss:$8 sps:$4 sm:$0xff]  }
  0xc9   :  { %1251 = vmatprep.subr.bf16.mxu0 %v3517_v53  ;;  %v3631_v53 = vld [vmem:[#allocation8 + $0x854] ss:$8 sps:$4 sm:$0xff]  }
  0xca   :  { %1610 = vmatpush1.bf16.msra.mxu1 %v3545_v54  ;;  %v3608_v54 = vld [vmem:[#allocation8 + $0x670] ss:$8 sps:$4 sm:$0xff]  }
  0xcb   :  { %1611 = vmatprep.subr.bf16.mxu1 %v3550_v55  ;;  %v3616_v55 = vld [vmem:[#allocation8 + $0x664] ss:$8 sps:$4 sm:$0xff]  }
  0xcc   :  { %1252 = vmatpush1.bf16.msra.mxu0 %v3515_v56  ;;  %v3629_v56 = vld [vmem:[#allocation8 + $0x850] ss:$8 sps:$4 sm:$0xff]  }
  0xcd   :  { %1253 = vmatprep.subr.bf16.mxu0 %v3520_v57  ;;  %v3637_v57 = vld [vmem:[#allocation8 + $0x844] ss:$8 sps:$4 sm:$0xff]  }
  0xce   :  { %1612 = vmatpush1.bf16.msra.mxu1 %v3548_v58  ;;  %v3614_v58 = vld [vmem:[#allocation8 + $0x660] ss:$8 sps:$4 sm:$0xff]  }
  0xcf   :  { %1613 = vmatprep.subr.bf16.mxu1 %v3553_v59  ;;  %v3622_v59 = vld [vmem:[#allocation8 + $0x654] ss:$8 sps:$4 sm:$0xff]  }
  0xd0   :  { %1254 = vmatpush1.bf16.msra.mxu0 %v3518_v60  ;;  %v3635_v60 = vld [vmem:[#allocation8 + $0x840] ss:$8 sps:$4 sm:$0xff]  }
  0xd1   :  { %1265 = vmatprep.subr.bf16.mxu0 %v3523_v61  ;;  %v3643_v61 = vld [vmem:[#allocation8 + $0x834] ss:$8 sps:$4 sm:$0xff]  }
  0xd2   :  { %1614 = vmatpush1.bf16.msra.mxu1 %v3551_v62  ;;  %v3620_v62 = vld [vmem:[#allocation8 + $0x650] ss:$8 sps:$4 sm:$0xff]  }
  0xd3   :  { %1615 = vmatprep.subr.bf16.mxu1 %v3556_v63  ;;  %v3628_v63 = vld [vmem:[#allocation8 + $0x644] ss:$8 sps:$4 sm:$0xff]  }
  0xd4   :  { %1266 = vmatpush2.bf16.msra.mxu0 %v3521_v0  ;;  %v3641_v0 = vld [vmem:[#allocation8 + $0x830] ss:$8 sps:$4 sm:$0xff]  }
  0xd5   :  { %1267 = vmatprep.subr.bf16.mxu0 %v3529_v1  ;;  %v3649_v1 = vld [vmem:[#allocation8 + $0x824] ss:$8 sps:$4 sm:$0xff]  }
  0xd6   :  { %1616 = vmatpush2.bf16.msra.mxu1 %v3554_v2  ;;  %v3626_v2 = vld [vmem:[#allocation8 + $0x640] ss:$8 sps:$4 sm:$0xff]  }
  0xd7   :  { %1617 = vmatprep.subr.bf16.mxu1 %v3559_v3  ;;  %v3634_v3 = vld [vmem:[#allocation8 + $0x634] ss:$8 sps:$4 sm:$0xff]  }
  0xd8   :  { %1268 = vmatpush2.bf16.msra.mxu0 %v3527_v4  ;;  %v3647_v4 = vld [vmem:[#allocation8 + $0x820] ss:$8 sps:$4 sm:$0xff]  }
  0xd9   :  { %1269 = vmatprep.subr.bf16.mxu0 %v3535_v6  ;;  %v3655_v6 = vld [vmem:[#allocation8 + $0x914] ss:$8 sps:$4 sm:$0xff]  }
  0xda   :  { %1618 = vmatpush2.bf16.msra.mxu1 %v3557_v7  ;;  %v3632_v7 = vld [vmem:[#allocation8 + $0x630] ss:$8 sps:$4 sm:$0xff]  }
  0xdb   :  { %1619 = vmatprep.subr.bf16.mxu1 %v3565_v8  ;;  %v3640_v8 = vld [vmem:[#allocation8 + $0x624] ss:$8 sps:$4 sm:$0xff]  }
  0xdc   :  { %1270 = vmatpush2.bf16.msra.mxu0 %v3533_v9  ;;  %v3653_v9 = vld [vmem:[#allocation8 + $0x910] ss:$8 sps:$4 sm:$0xff]  }
  0xdd   :  { %1642 = vmatprep.subr.bf16.mxu0 %v3562_v10  ;;  %v3661_v10 = vld [vmem:[#allocation8 + $0x904] ss:$8 sps:$4 sm:$0xff]  }
  0xde   :  { %1620 = vmatpush2.bf16.msra.mxu1 %v3563_v11  ;;  %v3638_v11 = vld [vmem:[#allocation8 + $0x620] ss:$8 sps:$4 sm:$0xff]  }
  0xdf   :  { %1272 = vmatmul.mubr.bf16.vlgmr.msra.gmra.mxu0 %v304_v14  ;;  %1621 = vmatprep.subr.bf16.mxu1 %v3571_v12  ;;  %v3646_v12 = vld [vmem:[#allocation8 + $0x714] ss:$8 sps:$4 sm:$0xff]  }
  0xe0   :  { %1643 = vmatpush1.bf16.msra.mxu0 %v3560_v13  ;;  %1672 = vmatprep.mubr.bf16.mxu0 %v3954_v22  ;;  %v3659_v13 = vld [vmem:[#allocation8 + $0x900] ss:$8 sps:$4 sm:$0xff]   ;;  %v3667_v14 = vld [vmem:[#allocation8 + $0x8f4] ss:$8 sps:$4 sm:$0xff]  }
  0xe1   :  { %1644 = vmatprep.subr.bf16.mxu0 %v3568_v15  ;;  %v3644_v15 = vld [vmem:[#allocation8 + $0x710] ss:$8 sps:$4 sm:$0xff]   ;;  %v3658_v22 = vld [vmem:[#allocation8 + $0x6f4] ss:$8 sps:$4 sm:$0xff]  }
  0xe2   :  { %1622 = vmatpush2.bf16.msra.mxu1 %v3569_v16  ;;  %v3652_v16 = vld [vmem:[#allocation8 + $0x704] ss:$8 sps:$4 sm:$0xff]  }
  0xe3   :  { %1623 = vmatprep.subr.bf16.mxu1 %v3577_v18  ;;  %v3665_v18 = vld [vmem:[#allocation8 + $0x8f0] ss:$8 sps:$4 sm:$0xff]  }
  0xe4   :  { %1645 = vmatpush1.bf16.msra.mxu0 %v3566_v19  ;;  %v3673_v19 = vld [vmem:[#allocation8 + $0x8e4] ss:$8 sps:$4 sm:$0xff]  }
  0xe5   :  { %1646 = vmatprep.subr.bf16.mxu0 %v3574_v20  ;;  %v3650_v20 = vld [vmem:[#allocation8 + $0x700] ss:$8 sps:$4 sm:$0xff]  }
  0xe6   :  { %1624 = vmatpush2.bf16.msra.mxu1 %v3575_v21  ;;  %v4023_v21 = vld.sshfl [vmem:[#allocation2] sm:$0x33 pattern:$0x75316420] }
  0xe7   :  { %1625 = vmatprep.subr.bf16.mxu1 %v3583_v23  ;;  %v1991_v23 = vcombine.high %v4023_v21, %v4023_v21 }
  0xe8   :  { %1647 = vmatpush1.bf16.msra.mxu0 %v3572_v24  ;;  %v3671_v24 = vld [vmem:[#allocation8 + $0x8e0] ss:$8 sps:$4 sm:$0xff]  }
  0xe9   :  { %1648 = vmatprep.subr.bf16.mxu0 %v3580_v17  ;;  %v3679_v17 = vld [vmem:[#allocation8 + $0x8d4] ss:$8 sps:$4 sm:$0xff]  }
  0xea   :  { %1626 = vmatpush2.bf16.msra.mxu1 %v3581_v25  ;;  %v4028_v25 = vrot.slane %v1991_v23, %v3996_v48  ;;  %v3740_v23 = vld [vmem:[#allocation8 + $0xa10] ss:$8 sps:$4 sm:$0xff]  }
  0xeb   :  { %1627 = vmatprep.subr.bf16.mxu1 %v3589_v26  ;;  %v3656_v26 = vld [vmem:[#allocation8 + $0x6f0] ss:$8 sps:$4 sm:$0xff]  }
  0xec   :  { %1649 = vmatpush1.bf16.msra.mxu0 %v3578_v27  ;;  %v68_v27 = vld [vmem:[#allocation8 + $0xb20] sm:$0xff] }
  0xed   :  { %1650 = vmatprep.subr.bf16.mxu0 %v3586_v28  ;;  %v3664_v28 = vld [vmem:[#allocation8 + $0x6e4] ss:$8 sps:$4 sm:$0xff]  }
  0xee   :  { %1628 = vmatpush2.bf16.msra.mxu1 %v3587_v29  ;;  %v3677_v29 = vld [vmem:[#allocation8 + $0x8d0] ss:$8 sps:$4 sm:$0xff]  }
  0xef   :  { %1629 = vmatprep.subr.bf16.mxu1 %v3595_v30  ;;  %v3685_v30 = vld [vmem:[#allocation8 + $0x8c4] ss:$8 sps:$4 sm:$0xff]  }
  0xf0   :  { %1651 = vmatpush1.bf16.msra.mxu0 %v3584_v31  ;;  %v69_v31 = vunpack.c.l.bf16 %v68_v27 }
  0xf1   :  { %1652 = vmatprep.subr.bf16.mxu0 %v3592_v5  ;;  %v3662_v5 = vld [vmem:[#allocation8 + $0x6e0] ss:$8 sps:$4 sm:$0xff]  }
  0xf2   :  { %1630 = vmatpush2.bf16.msra.mxu1 %v3593_v32  ;;  %v3670_v32 = vld [vmem:[#allocation8 + $0x6d4] ss:$8 sps:$4 sm:$0xff]  }
  0xf3   :  { %1942 = vmatprep.subr.bf16.mxu1 %v3607_v33  ;;  %v70_v33 = vunpack.c.h.bf16 %v68_v27  ;;  %v3752_v27 = vld [vmem:[#allocation8 + $0x9f0] ss:$8 sps:$4 sm:$0xff]  }
  0xf4   :  { %1653 = vmatpush1.bf16.msra.mxu0 %v3590_v34  ;;  %v3683_v34 = vld [vmem:[#allocation8 + $0x8c0] ss:$8 sps:$4 sm:$0xff]  }
  0xf5   :  { %1654 = vmatprep.subr.bf16.mxu0 %v3598_v36  ;;  %1632 = vmatmul.mubr.bf16.vlgmr.msra.gmra.mxu1 %v1354_v37  ;;  %v3691_v36 = vld [vmem:[#allocation8 + $0x8b4] ss:$8 sps:$4 sm:$0xff]   ;;  %v73_v37 = vrot.slane %v69_v31, 4 }
  0xf6   :  { %1943 = vmatpush1.bf16.msra.mxu1 %v3605_v38  ;;  %v3668_v38 = vld [vmem:[#allocation8 + $0x6d0] ss:$8 sps:$4 sm:$0xff]  }
  0xf7   :  { %1944 = vmatprep.subr.bf16.mxu1 %v3613_v39  ;;  %v3676_v39 = vld [vmem:[#allocation8 + $0x6c4] ss:$8 sps:$4 sm:$0xff]  }
  0xf8   :  { %1655 = vmatpush1.bf16.msra.mxu0 %v3596_v40  ;;  %v74_v40 = vrot.slane %v70_v33, 4 }
  0xf9   :  { %2332 = vmatprep.subr.bf16.mxu0 %v3601_v41  ;;  %v3689_v41 = vld [vmem:[#allocation8 + $0x8b0] ss:$8 sps:$4 sm:$0xff]  }
  0xfa   :  { %1945 = vmatpush1.bf16.msra.mxu1 %v3611_v43  ;;  %v3697_v43 = vld [vmem:[#allocation8 + $0x8a4] ss:$8 sps:$4 sm:$0xff]  }
  0xfb   :  { %3132 = vmatmul.mubr.msk.bf16.vlgmr.msra.gmra.mxu0 %vm1595_vm1, %v1362_v44  ;;  %1946 = vmatprep.subr.bf16.mxu1 %v3619_v45  ;;  %v4031_v44 = vadd.f32 %v73_v37, %v69_v31  ;;  %v233_v45 = vsub.s32 0, %v3993_v42  ;;  %v3764_v31 = vld [vmem:[#allocation8 + $0x9d0] ss:$8 sps:$4 sm:$0xff]  }
  0xfc   :  { %2333 = vmatpush1.bf16.msra.mxu0 %v3599_v46  ;;  %2364 = vmatprep.mubr.bf16.mxu0 %v4028_v25  ;;  %v3674_v46 = vld [vmem:[#allocation8 + $0x6c0] ss:$8 sps:$4 sm:$0xff]  }
  0xfd   :  { %2334 = vmatprep.subr.bf16.mxu0 %v3604_v47  ;;  %v3682_v47 = vld [vmem:[#allocation8 + $0x6b4] ss:$8 sps:$4 sm:$0xff]  }
  0xfe   :  { %1947 = vmatpush1.bf16.msra.mxu1 %v3617_v35  ;;  %v4034_v35 = vadd.f32 %v74_v40, %v70_v33  ;;  %v3778_v33 = vld [vmem:[#allocation8 + $0x9b4] ss:$8 sps:$4 sm:$0xff]  }
  0xff   :  { %1948 = vmatprep.subr.bf16.mxu1 %v3625_v49  ;;  %v3695_v49 = vld [vmem:[#allocation8 + $0x8a0] ss:$8 sps:$4 sm:$0xff]  }
 0x100   :  { %2335 = vmatpush1.bf16.msra.mxu0 %v3602_v50  ;;  %v3703_v50 = vld [vmem:[#allocation8 + $0x794] ss:$8 sps:$4 sm:$0xff]  }
 0x101   :  { %2336 = vmatprep.subr.bf16.mxu0 %v3610_v51  ;;  %v234_v51 = vrot.slane %v4031_v44, %v233_v45 }
 0x102   :  { %1949 = vmatpush1.bf16.msra.mxu1 %v3623_v52  ;;  %v3680_v52 = vld [vmem:[#allocation8 + $0x6b0] ss:$8 sps:$4 sm:$0xff]  }
 0x103   :  { %1950 = vmatprep.subr.bf16.mxu1 %v3631_v53  ;;  %v3688_v53 = vld [vmem:[#allocation8 + $0x6a4] ss:$8 sps:$4 sm:$0xff]  }
 0x104   :  { %2337 = vmatpush1.bf16.msra.mxu0 %v3608_v54  ;;  %v238_v54 = vrot.slane %v4034_v35, %v233_v45 }
 0x105   :  { %2338 = vmatprep.subr.bf16.mxu0 %v3616_v55 }
 0x106   :  { %1951 = vmatpush1.bf16.msra.mxu1 %v3629_v56 }
 0x107   :  { %1952 = vmatprep.subr.bf16.mxu1 %v3637_v57  ;;  %v3686_v57 = vld [vmem:[#allocation8 + $0x6a0] ss:$8 sps:$4 sm:$0xff]  }
 0x108   :  { %2339 = vmatpush1.bf16.msra.mxu0 %v3614_v58 }
 0x109   :  { %2340 = vmatprep.subr.bf16.mxu0 %v3622_v59 }
 0x10a   :  { %1953 = vmatpush1.bf16.msra.mxu1 %v3635_v60  ;;  %v3694_v60 = vld [vmem:[#allocation8 + $0x994] ss:$8 sps:$4 sm:$0xff]  }
 0x10b   :  { %1954 = vmatprep.subr.bf16.mxu1 %v3643_v61 }
 0x10c   :  { %2341 = vmatpush1.bf16.msra.mxu0 %v3620_v62 }
 0x10d   :  { %2342 = vmatprep.subr.bf16.mxu0 %v3628_v63 }
 0x10e   :  { %1955 = vmatpush1.bf16.msra.mxu1 %v3641_v0 }
 0x10f   :  { %1956 = vmatprep.subr.bf16.mxu1 %v3649_v1  ;;  %v4042_v1 = vrot.slane %v4023_v21, %v3996_v48  ;;  %v3712_v48 = vld [vmem:[#allocation8 + $0x964] ss:$8 sps:$4 sm:$0xff]   ;;  %v3734_v21 = vld [vmem:[#allocation8 + $0x920] ss:$8 sps:$4 sm:$0xff]  }
 0x110   :  { %2343 = vmatpush1.bf16.msra.mxu0 %v3626_v2 }
 0x111   :  { %2344 = vmatprep.subr.bf16.mxu0 %v3634_v3  ;;  %v3692_v3 = vld [vmem:[#allocation8 + $0x990] ss:$8 sps:$4 sm:$0xff]  }
 0x112   :  { %1957 = vmatpush1.bf16.msra.mxu1 %v3647_v4 }
 0x113   :  { %1958 = vmatprep.subr.bf16.mxu1 %v3655_v6 }
 0x114   :  { %2345 = vmatpush1.bf16.msra.mxu0 %v3632_v7  ;;  %v3700_v7 = vld [vmem:[#allocation8 + $0x984] ss:$8 sps:$4 sm:$0xff]  }
 0x115   :  { %2346 = vmatprep.subr.bf16.mxu0 %v3640_v8 }
 0x116   :  { %1959 = vmatpush2.bf16.msra.mxu1 %v3653_v9  ;;  %v3698_v9 = vld [vmem:[#allocation8 + $0x980] ss:$8 sps:$4 sm:$0xff]  }
 0x117   :  { %1960 = vmatprep.subr.bf16.mxu1 %v3661_v10  ;;  %v3706_v10 = vld [vmem:[#allocation8 + $0x974] ss:$8 sps:$4 sm:$0xff]  }
 0x118   :  { %2347 = vmatpush1.bf16.msra.mxu0 %v3638_v11  ;;  %v3704_v11 = vld [vmem:[#allocation8 + $0x970] ss:$8 sps:$4 sm:$0xff]  }
 0x119   :  { %2348 = vmatprep.subr.bf16.mxu0 %v3646_v12  ;;  %v3710_v12 = vld [vmem:[#allocation8 + $0x960] ss:$8 sps:$4 sm:$0xff]  }
 0x11a   :  { %1961 = vmatpush2.bf16.msra.mxu1 %v3659_v13  ;;  %v3718_v13 = vld [vmem:[#allocation8 + $0x954] ss:$8 sps:$4 sm:$0xff]  }
 0x11b   :  { %1962 = vmatprep.subr.bf16.mxu1 %v3667_v14  ;;  %v3716_v14 = vld [vmem:[#allocation8 + $0x950] ss:$8 sps:$4 sm:$0xff]  }
 0x11c   :  { %2349 = vmatpush2.bf16.msra.mxu0 %v3644_v15  ;;  %v3724_v15 = vld [vmem:[#allocation8 + $0x944] ss:$8 sps:$4 sm:$0xff]  }
 0x11d   :  { %2350 = vmatprep.subr.bf16.mxu0 %v3652_v16  ;;  %v3722_v16 = vld [vmem:[#allocation8 + $0x940] ss:$8 sps:$4 sm:$0xff]  }
 0x11e   :  { %1963 = vmatpush2.bf16.msra.mxu1 %v3665_v18  ;;  %v3730_v18 = vld [vmem:[#allocation8 + $0x934] ss:$8 sps:$4 sm:$0xff]  }
 0x11f   :  { %1964 = vmatprep.subr.bf16.mxu1 %v3673_v19  ;;  %v3728_v19 = vld [vmem:[#allocation8 + $0x930] ss:$8 sps:$4 sm:$0xff]  }
 0x120   :  { %2351 = vmatpush2.bf16.msra.mxu0 %v3650_v20  ;;  %v3736_v20 = vld [vmem:[#allocation8 + $0x924] ss:$8 sps:$4 sm:$0xff]  }
 0x121   :  { %2352 = vmatprep.subr.bf16.mxu0 %v3658_v22  ;;  %v3742_v22 = vld [vmem:[#allocation8 + $0xa14] ss:$8 sps:$4 sm:$0xff]  }
 0x122   :  { %1965 = vmatpush2.bf16.msra.mxu1 %v3671_v24  ;;  %v3748_v24 = vld [vmem:[#allocation8 + $0xa04] ss:$8 sps:$4 sm:$0xff]  }
 0x123   :  { %1966 = vmatprep.subr.bf16.mxu1 %v3679_v17  ;;  %v3746_v17 = vld [vmem:[#allocation8 + $0xa00] ss:$8 sps:$4 sm:$0xff]  }
 0x124   :  { %2353 = vmatpush2.bf16.msra.mxu0 %v3656_v26  ;;  %v3754_v26 = vld [vmem:[#allocation8 + $0x9f4] ss:$8 sps:$4 sm:$0xff]  }
 0x125   :  { %2354 = vmatprep.subr.bf16.mxu0 %v3664_v28  ;;  %v3760_v28 = vld [vmem:[#allocation8 + $0x9e4] ss:$8 sps:$4 sm:$0xff]  }
 0x126   :  { %1967 = vmatpush2.bf16.msra.mxu1 %v3677_v29  ;;  %v3758_v29 = vld [vmem:[#allocation8 + $0x9e0] ss:$8 sps:$4 sm:$0xff]  }
 0x127   :  { %1968 = vmatprep.subr.bf16.mxu1 %v3685_v30  ;;  %v3766_v30 = vld [vmem:[#allocation8 + $0x9d4] ss:$8 sps:$4 sm:$0xff]  }
 0x128   :  { %2355 = vmatpush2.bf16.msra.mxu0 %v3662_v5  ;;  %v3772_v5 = vld [vmem:[#allocation8 + $0x9c4] ss:$8 sps:$4 sm:$0xff]  }
 0x129   :  { %2356 = vmatprep.subr.bf16.mxu0 %v3670_v32  ;;  %v3770_v32 = vld [vmem:[#allocation8 + $0x9c0] ss:$8 sps:$4 sm:$0xff]  }
 0x12a   :  { %1969 = vmatpush2.bf16.msra.mxu1 %v3683_v34  ;;  %v3776_v34 = vld [vmem:[#allocation8 + $0x9b0] ss:$8 sps:$4 sm:$0xff]  }
 0x12b   :  { %1970 = vmatprep.subr.bf16.mxu1 %v3691_v36  ;;  %v3784_v36 = vld [vmem:[#allocation8 + $0x9a4] ss:$8 sps:$4 sm:$0xff]  }
 0x12c   :  { %2357 = vmatpush2.bf16.msra.mxu0 %v3668_v38  ;;  %v3782_v38 = vld [vmem:[#allocation8 + $0x9a0] ss:$8 sps:$4 sm:$0xff]  }
 0x12d   :  { %2358 = vmatprep.subr.bf16.mxu0 %v3676_v39 }
 0x12e   :  { %1971 = vmatpush2.bf16.msra.mxu1 %v3689_v41 }
 0x12f   :  { %1972 = vmatprep.subr.bf16.mxu1 %v3697_v43 }
 0x130   :  { %2359 = vmatpush2.bf16.msra.mxu0 %v3674_v46 }
 0x131   :  { %2360 = vmatprep.subr.bf16.mxu0 %v3682_v47 }
 0x132   :  { %1973 = vmatpush2.bf16.msra.mxu1 %v3695_v49 }
 0x133   :  { %v1109_v55 = vpop.f32.mrf.mxu0  ;;  %2373 = vmatprep.subr.bf16.mxu1 %v3703_v50 }
 0x134   :  { %v1110_v56 = vadd.f32 %v1109_v55, %v234_v51  ;;  %2361 = vmatpush2.bf16.msra.mxu0 %v3680_v52 }
 0x135   :  { %v1111_v58 = vpop.f32.mrf.mxu0  ;;  %v1150_v59 = vpop.f32.mrf.mxu1  ;;  %2362 = vmatprep.subr.bf16.mxu0 %v3688_v53 }
 0x136   :  { %v1112_v61 = vadd.f32 %v1111_v58, %v238_v54  ;;  %v4038_v62 = vadd.f32 %v1150_v59, %v1110_v56 }
 0x137   :  { %v1113_v63 = vpop.f32.mrf.mxu0  ;;  %v1152_v0 = vpop.f32.mrf.mxu1 }
 0x138   :  { %v4044_v2 = vadd.f32 %v1152_v0, %v1112_v61  ;;  %2363 = vmatpush2.bf16.msra.mxu0 %v3686_v57  ;;  %v3701_v63 = vld [vmem:[#allocation8 + $0x790] ss:$8 sps:$4 sm:$0xff]   ;;  %v2007_v0 = vcombine.high %v4028_v25, %v4028_v25 }
 0x139   :  { %v1114_v4 = vpop.f32.mrf.mxu0  ;;  %v1154_v6 = vpop.f32.mrf.mxu1  ;;  %2606 = vmatprep.subr.bf16.mxu0 %v3694_v60 }
 0x13a   :  { %v3709_v4 = vld [vmem:[#allocation8 + $0x784] ss:$8 sps:$4 sm:$0xff]   ;;  %v3713_v6 = vld [vmem:[#allocation8 + $0x770] ss:$8 sps:$4 sm:$0xff]  }
 0x13b   :  { %v1155_v8 = vpop.f32.mrf.mxu1  ;;  %2365 = vmatmul.mubr.bf16.vlgmr.msra.gmra.mxu0 %v4042_v1 }
 0x13c   :  { %2607 = vmatpush1.bf16.msra.mxu0 %v3692_v3  ;;  %v1333_v8 = vsub.s32 1, %v3993_v42 }
 0x13d   :  { %2608 = vmatprep.subr.bf16.mxu0 %v3700_v7  ;;  %v3721_v7 = vld [vmem:[#allocation8 + $0x764] ss:$8 sps:$4 sm:$0xff]  }
 0x13e   :  { %v1334_v25 = vrot.slane %v4031_v44, %v1333_v8 }
 0x140   :  { %2609 = vmatpush1.bf16.msra.mxu0 %v3698_v9  ;;  %v3719_v9 = vld [vmem:[#allocation8 + $0x760] ss:$8 sps:$4 sm:$0xff]  }
 0x141   :  { %2610 = vmatprep.subr.bf16.mxu0 %v3706_v10  ;;  %v3727_v10 = vld [vmem:[#allocation8 + $0x754] ss:$8 sps:$4 sm:$0xff]  }
 0x144   :  { %2611 = vmatpush1.bf16.msra.mxu0 %v3704_v11 }
 0x145   :  { %2612 = vmatprep.subr.bf16.mxu0 %v3712_v48  ;;  %v3725_v48 = vld [vmem:[#allocation8 + $0x750] ss:$8 sps:$4 sm:$0xff]  }
 0x148   :  { %2613 = vmatpush1.bf16.msra.mxu0 %v3710_v12  ;;  %v1338_v12 = vrot.slane %v4034_v35, %v1333_v8  ;;  %v3811_v8 = vld [vmem:[#allocation8 + $0xa34] ss:$8 sps:$4 sm:$0xff]  }
 0x149   :  { %2614 = vmatprep.subr.bf16.mxu0 %v3718_v13  ;;  %v3733_v13 = vld [vmem:[#allocation8 + $0x744] ss:$8 sps:$4 sm:$0xff]  }
 0x14c   :  { %2615 = vmatpush1.bf16.msra.mxu0 %v3716_v14 }
 0x14d   :  { %2616 = vmatprep.subr.bf16.mxu0 %v3724_v15 }
 0x150   :  { %2617 = vmatpush1.bf16.msra.mxu0 %v3722_v16 }
 0x151   :  { %2618 = vmatprep.subr.bf16.mxu0 %v3730_v18  ;;  %v3731_v18 = vld [vmem:[#allocation8 + $0x740] ss:$8 sps:$4 sm:$0xff]  }
 0x154   :  { %2619 = vmatpush1.bf16.msra.mxu0 %v3728_v19 }
 0x155   :  { %2620 = vmatprep.subr.bf16.mxu0 %v3736_v20  ;;  %v3739_v20 = vld [vmem:[#allocation8 + $0x734] ss:$8 sps:$4 sm:$0xff]  }
 0x158   :  { %2621 = vmatpush1.bf16.msra.mxu0 %v3734_v21 }
 0x159   :  { %2622 = vmatprep.subr.bf16.mxu0 %v3742_v22 }
 0x15c   :  { %2623 = vmatpush2.bf16.msra.mxu0 %v3740_v23 }
 0x15d   :  { %2624 = vmatprep.subr.bf16.mxu0 %v3748_v24 }
 0x160   :  { %2625 = vmatpush2.bf16.msra.mxu0 %v3746_v17  ;;  %v3737_v17 = vld [vmem:[#allocation8 + $0x730] ss:$8 sps:$4 sm:$0xff]  }
 0x161   :  { %2626 = vmatprep.subr.bf16.mxu0 %v3754_v26 }
 0x164   :  { %2627 = vmatpush2.bf16.msra.mxu0 %v3752_v27 }
 0x165   :  { %2628 = vmatprep.subr.bf16.mxu0 %v3760_v28  ;;  %v3745_v28 = vld [vmem:[#allocation8 + $0x724] ss:$8 sps:$4 sm:$0xff]  }
 0x168   :  { %2629 = vmatpush2.bf16.msra.mxu0 %v3758_v29 }
 0x169   :  { %2630 = vmatprep.subr.bf16.mxu0 %v3766_v30 }
 0x16c   :  { %2631 = vmatpush2.bf16.msra.mxu0 %v3764_v31 }
 0x16d   :  { %2632 = vmatprep.subr.bf16.mxu0 %v3772_v5 }
 0x170   :  { %2633 = vmatpush2.bf16.msra.mxu0 %v3770_v32  ;;  %v3743_v32 = vld [vmem:[#allocation8 + $0x720] ss:$8 sps:$4 sm:$0xff]  }
 0x171   :  { %2634 = vmatprep.subr.bf16.mxu0 %v3778_v33 }
 0x173   :  { %v1191_v37 = vpop.f32.mrf.mxu0 }
 0x174   :  { %2635 = vmatpush2.bf16.msra.mxu0 %v3776_v34  ;;  %v1192_v49 = vadd.f32 %v1191_v37, %v4038_v62  ;;  %v3707_v62 = vld [vmem:[#allocation8 + $0x780] ss:$8 sps:$4 sm:$0xff]   ;;  %v3751_v34 = vld [vmem:[#allocation8 + $0x814] ss:$8 sps:$4 sm:$0xff]   ;;  %v3757_v37 = vld [vmem:[#allocation8 + $0x804] ss:$8 sps:$4 sm:$0xff]  }
 0x175   :  { %v1193_v39 = vpop.f32.mrf.mxu0  ;;  %v1232_v40 = vpop.f32.mrf.mxu1  ;;  %2636 = vmatprep.subr.bf16.mxu0 %v3784_v36  ;;  %v3749_v36 = vld [vmem:[#allocation8 + $0x810] ss:$8 sps:$4 sm:$0xff]  }
 0x176   :  { %v1194_v50 = vadd.f32 %v1193_v39, %v4044_v2  ;;  %v1233_v51 = vadd.f32 %v1232_v40, %v1192_v49  ;;  %v3715_v2 = vld [vmem:[#allocation8 + $0x774] ss:$8 sps:$4 sm:$0xff]   ;;  %v3761_v40 = vld [vmem:[#allocation8 + $0x7f0] ss:$8 sps:$4 sm:$0xff]   ;;  %v3779_v49 = vld [vmem:[#allocation8 + $0x7c0] ss:$8 sps:$4 sm:$0xff]  }
 0x177   :  { %v1195_v41 = vpop.f32.mrf.mxu0  ;;  %v1234_v43 = vpop.f32.mrf.mxu1  ;;  %v3763_v39 = vld [vmem:[#allocation8 + $0x7f4] ss:$8 sps:$4 sm:$0xff]  }
 0x178   :  { %2637 = vmatpush2.bf16.msra.mxu0 %v3782_v38  ;;  %v1235_v53 = vadd.f32 %v1234_v43, %v1194_v50  ;;  %v3755_v38 = vld [vmem:[#allocation8 + $0x800] ss:$8 sps:$4 sm:$0xff]   ;;  %v3769_v41 = vld [vmem:[#allocation8 + $0x7e4] ss:$8 sps:$4 sm:$0xff]   ;;  %v3787_v50 = vld [vmem:[#allocation8 + $0x7b4] ss:$8 sps:$4 sm:$0xff]  }
 0x179   :  { %v1196_v45 = vpop.f32.mrf.mxu0  ;;  %v1236_v46 = vpop.f32.mrf.mxu1  ;;  %v3767_v43 = vld [vmem:[#allocation8 + $0x7e0] ss:$8 sps:$4 sm:$0xff]  }
 0x17a   :  { %v3775_v45 = vld [vmem:[#allocation8 + $0x7d4] ss:$8 sps:$4 sm:$0xff]   ;;  %v3773_v46 = vld [vmem:[#allocation8 + $0x7d0] ss:$8 sps:$4 sm:$0xff]  }
 0x17b   :  { %v1237_v47 = vpop.f32.mrf.mxu1 }
 0x17c   :  { %v3781_v47 = vld [vmem:[#allocation8 + $0x7c4] ss:$8 sps:$4 sm:$0xff]  }
 0x19f   :  { %v1273_v52 = vpop.f32.mrf.mxu0 }
 0x1a0   :  { %v1274_v54 = vadd.f32 %v1273_v52, %v1233_v51  ;;  %v3785_v51 = vld [vmem:[#allocation8 + $0x7b0] ss:$8 sps:$4 sm:$0xff]   ;;  %v3790_v52 = vld [vmem:[#allocation8 + $0x7a4] ss:$8 sps:$4 sm:$0xff]  }
 0x1a1   :  { %v1275_v55 = vpop.f32.mrf.mxu0 }
 0x1a2   :  { %v1276_v56 = vadd.f32 %v1275_v55, %v1235_v53  ;;  %v1280_v57 = vmax.f32 %v1274_v54, 0.0  ;;  %v3788_v53 = vld [vmem:[#allocation8 + $0x7a0] ss:$8 sps:$4 sm:$0xff]   ;;  %v2006_v54 = vcombine.high %v4042_v1, %v4042_v1  ;;  %v3791_v55 = vld [vmem:[#allocation8 + $0xa90] ss:$8 sps:$4 sm:$0xff]  }
 0x1a3   :  { %v1277_v58 = vpop.f32.mrf.mxu0  ;;  %v3805_v1 = vld [vmem:[#allocation8 + $0xa54] ss:$8 sps:$4 sm:$0xff]  }
 0x1a4   :  { %v1281_v59 = vmax.f32 %v1276_v56, 0.0  ;;  %v1282_v3 = vpack.c.bf16 %v1280_v57, %v1280_v57  ;;  %v3793_v56 = vld [vmem:[#allocation8 + $0xa94] ss:$8 sps:$4 sm:$0xff]   ;;  %v3796_v57 = vld [vmem:[#allocation8 + $0xa84] ss:$8 sps:$4 sm:$0xff]  }
 0x1a5   :  { %v1278_v60 = vpop.f32.mrf.mxu0  ;;  %v3794_v58 = vld [vmem:[#allocation8 + $0xa80] ss:$8 sps:$4 sm:$0xff]  }
 0x1a6   :  { %v1283_v61 = vpack.c.bf16 %v1281_v59, %v1281_v59  ;;  %v3799_v59 = vld [vmem:[#allocation8 + $0xa74] ss:$8 sps:$4 sm:$0xff]   ;;  %v3797_v60 = vld [vmem:[#allocation8 + $0xa70] ss:$8 sps:$4 sm:$0xff]  }
 0x1a8   :  { %1974 = vmatprep.mubr.bf16.mxu1 %v1283_v61  ;;  %v3802_v61 = vld [vmem:[#allocation8 + $0xa64] ss:$8 sps:$4 sm:$0xff]  }
 0x1a9   :  { %1975 = vmatmul.mubr.bf16.vlgmr.msra.gmra.mxu1 %v1282_v3 }
 0x1aa   :  { %2374 = vmatpush1.bf16.msra.mxu1 %v3701_v63  ;;  %2405 = vmatprep.mubr.bf16.mxu1 %v2007_v0  ;;  %v3800_v63 = vld [vmem:[#allocation8 + $0xa60] ss:$8 sps:$4 sm:$0xff]  }
 0x1ab   :  { %2375 = vmatprep.subr.bf16.mxu1 %v3709_v4  ;;  %v3803_v4 = vld [vmem:[#allocation8 + $0xa50] ss:$8 sps:$4 sm:$0xff]  }
 0x1ae   :  { %2376 = vmatpush1.bf16.msra.mxu1 %v3707_v62 }
 0x1af   :  { %2377 = vmatprep.subr.bf16.mxu1 %v3715_v2  ;;  %v3808_v2 = vld [vmem:[#allocation8 + $0xa44] ss:$8 sps:$4 sm:$0xff]  }
 0x1b2   :  { %2378 = vmatpush1.bf16.msra.mxu1 %v3713_v6 }
 0x1b3   :  { %2379 = vmatprep.subr.bf16.mxu1 %v3721_v7  ;;  %v3806_v7 = vld [vmem:[#allocation8 + $0xa40] ss:$8 sps:$4 sm:$0xff]  }
 0x1b5   :  { %v1633_v11 = vpop.f32.mrf.mxu1 }
 0x1b6   :  { %2380 = vmatpush1.bf16.msra.mxu1 %v3719_v9  ;;  %v1634_v15 = vadd.f32 %v1633_v11, %v1334_v25  ;;  %v3809_v9 = vld [vmem:[#allocation8 + $0xa30] ss:$8 sps:$4 sm:$0xff]   ;;  %v3812_v25 = vld [vmem:[#allocation8 + $0xa20] ss:$8 sps:$4 sm:$0xff]   ;;  %v3817_v11 = vld [vmem:[#allocation8 + $0xb14] ss:$8 sps:$4 sm:$0xff]  }
 0x1b7   :  { %2381 = vmatprep.subr.bf16.mxu1 %v3727_v10  ;;  %v1635_v14 = vpop.f32.mrf.mxu1  ;;  %v3814_v10 = vld [vmem:[#allocation8 + $0xa24] ss:$8 sps:$4 sm:$0xff]  }
 0x1b8   :  { %v1636_v19 = vadd.f32 %v1635_v14, %v1338_v12  ;;  %v3820_v12 = vld [vmem:[#allocation8 + $0xb04] ss:$8 sps:$4 sm:$0xff]   ;;  %v3823_v14 = vld [vmem:[#allocation8 + $0xaf4] ss:$8 sps:$4 sm:$0xff]  }
 0x1b9   :  { %v1637_v16 = vpop.f32.mrf.mxu1 }
 0x1ba   :  { %2382 = vmatpush1.bf16.msra.mxu1 %v3725_v48  ;;  %v3815_v48 = vld [vmem:[#allocation8 + $0xb10] ss:$8 sps:$4 sm:$0xff]   ;;  %v3826_v16 = vld [vmem:[#allocation8 + $0xae4] ss:$8 sps:$4 sm:$0xff]  }
 0x1bb   :  { %2383 = vmatprep.subr.bf16.mxu1 %v3733_v13  ;;  %v1674_v21 = vpop.f32.mrf.mxu0  ;;  %v1638_v22 = vpop.f32.mrf.mxu1  ;;  %v3818_v13 = vld [vmem:[#allocation8 + $0xb00] ss:$8 sps:$4 sm:$0xff]  }
 0x1bc   :  { %v1675_v23 = vadd.f32 %v1674_v21, %v1634_v15  ;;  %v3821_v15 = vld [vmem:[#allocation8 + $0xaf0] ss:$8 sps:$4 sm:$0xff]   ;;  %v3832_v21 = vld [vmem:[#allocation8 + $0xac4] ss:$8 sps:$4 sm:$0xff]   ;;  %v3830_v22 = vld [vmem:[#allocation8 + $0xac0] ss:$8 sps:$4 sm:$0xff]  }
 0x1bd   :  { %v1676_v24 = vpop.f32.mrf.mxu0 }
 0x1be   :  { %2384 = vmatpush1.bf16.msra.mxu1 %v3731_v18  ;;  %v1681_v26 = vmax.f32 %v1675_v23, 0.0  ;;  %v1677_v27 = vadd.f32 %v1676_v24, %v1636_v19  ;;  %v3824_v18 = vld [vmem:[#allocation8 + $0xae0] ss:$8 sps:$4 sm:$0xff]   ;;  %v3829_v19 = vld [vmem:[#allocation8 + $0xad4] ss:$8 sps:$4 sm:$0xff]  }
 0x1bf   :  { %2385 = vmatprep.subr.bf16.mxu1 %v3739_v20  ;;  %v1678_v29 = vpop.f32.mrf.mxu0  ;;  %v3827_v20 = vld [vmem:[#allocation8 + $0xad0] ss:$8 sps:$4 sm:$0xff]   ;;  %v3835_v23 = vld [vmem:[#allocation8 + $0xab4] ss:$8 sps:$4 sm:$0xff]  }
 0x1c0   :  { %v1682_v30 = vmax.f32 %v1677_v27, 0.0  ;;  %v1683_v31 = vpack.c.bf16 %v1681_v26, %v1681_v26  ;;  %v3833_v24 = vld [vmem:[#allocation8 + $0xab0] ss:$8 sps:$4 sm:$0xff]   ;;  %v3836_v26 = vld [vmem:[#allocation8 + $0xaa0] ss:$8 sps:$4 sm:$0xff]  }
 0x1c1   :  { %v1679_v5 = vpop.f32.mrf.mxu0 }
 0x1c2   :  { %2386 = vmatpush1.bf16.msra.mxu1 %v3737_v17  ;;  %v1684_v33 = vpack.c.bf16 %v1682_v30, %v1682_v30  ;;  %v3838_v17 = vld [vmem:[#allocation8 + $0xaa4] ss:$8 sps:$4 sm:$0xff]  }
 0x1c3   :  { %2387 = vmatprep.subr.bf16.mxu1 %v3745_v28 }
 0x1c4   :  { %2638 = vmatprep.mubr.bf16.mxu0 %v1684_v33 }
 0x1c5   :  { %2639 = vmatmul.mubr.bf16.vlgmr.msra.gmra.mxu0 %v1683_v31 }
 0x1c6   :  { %2388 = vmatpush1.bf16.msra.mxu1 %v3743_v32 }
 0x1c7   :  { %2389 = vmatprep.subr.bf16.mxu1 %v3751_v34  ;;  %v2651_v34 = vsub.s32 2, %v3993_v42 }
 0x1ca   :  { %2390 = vmatpush2.bf16.msra.mxu1 %v3749_v36 }
 0x1cb   :  { %2391 = vmatprep.subr.bf16.mxu1 %v3757_v37 }
 0x1ce   :  { %2392 = vmatpush2.bf16.msra.mxu1 %v3755_v38 }
 0x1cf   :  { %2393 = vmatprep.subr.bf16.mxu1 %v3763_v39 }
 0x1d2   :  { %2394 = vmatpush2.bf16.msra.mxu1 %v3761_v40  ;;  %v2652_v40 = vrot.slane %v4031_v44, %v2651_v34 }
 0x1d3   :  { %2395 = vmatprep.subr.bf16.mxu1 %v3769_v41 }
 0x1d6   :  { %2396 = vmatpush2.bf16.msra.mxu1 %v3767_v43 }
 0x1d7   :  { %2397 = vmatprep.subr.bf16.mxu1 %v3775_v45 }
 0x1da   :  { %2398 = vmatpush2.bf16.msra.mxu1 %v3773_v46  ;;  %v2656_v46 = vrot.slane %v4034_v35, %v2651_v34 }
 0x1db   :  { %2399 = vmatprep.subr.bf16.mxu1 %v3781_v47 }
 0x1de   :  { %2400 = vmatpush2.bf16.msra.mxu1 %v3779_v49 }
 0x1df   :  { %2401 = vmatprep.subr.bf16.mxu1 %v3787_v50 }
 0x1e2   :  { %2402 = vmatpush2.bf16.msra.mxu1 %v3785_v51 }
 0x1e3   :  { %2403 = vmatprep.subr.bf16.mxu1 %v3790_v52 }
 0x1e6   :  { %2404 = vmatpush2.bf16.msra.mxu1 %v3788_v53 }
 0x1e7   :  { %2863 = vmatprep.subr.bf16.mxu1 %v3793_v56 }
 0x1e9   :  { %2406 = vmatmul.mubr.bf16.vlgmr.msra.gmra.mxu1 %v2006_v54 }
 0x1ea   :  { %2864 = vmatpush1.bf16.msra.mxu1 %v3791_v55 }
 0x1eb   :  { %2865 = vmatprep.subr.bf16.mxu1 %v3796_v57  ;;  %v2697_v57 = vsub.s32 3, %v3993_v42 }
 0x1ee   :  { %2866 = vmatpush1.bf16.msra.mxu1 %v3794_v58  ;;  %v2698_v58 = vrot.slane %v4031_v44, %v2697_v57 }
 0x1ef   :  { %2867 = vmatprep.subr.bf16.mxu1 %v3799_v59  ;;  %v2702_v59 = vrot.slane %v4034_v35, %v2697_v57 }
 0x1f2   :  { %2868 = vmatpush1.bf16.msra.mxu1 %v3797_v60 }
 0x1f3   :  { %2869 = vmatprep.subr.bf16.mxu1 %v3802_v61 }
 0x1f6   :  { %2870 = vmatpush1.bf16.msra.mxu1 %v3800_v63 }
 0x1f7   :  { %2871 = vmatprep.subr.bf16.mxu1 %v3805_v1 }
 0x1fa   :  { %2872 = vmatpush1.bf16.msra.mxu1 %v3803_v4 }
 0x1fb   :  { %v4056_v0 = vpop.f32.mrf.mxu0  ;;  %2873 = vmatprep.subr.bf16.mxu1 %v3808_v2 }
 0x1fd   :  { %v2368_v3 = vpop.f32.mrf.mxu0 }
 0x1fe   :  { %2874 = vmatpush1.bf16.msra.mxu1 %v3806_v7 }
 0x1ff   :  { %v2370_v62 = vpop.f32.mrf.mxu0  ;;  %2875 = vmatprep.subr.bf16.mxu1 %v3811_v8 }
 0x201   :  { %v2371_v6 = vpop.f32.mrf.mxu0 }
 0x202   :  { %2876 = vmatpush1.bf16.msra.mxu1 %v3809_v9 }
 0x203   :  { %2877 = vmatprep.subr.bf16.mxu1 %v3814_v10 }
 0x206   :  { %2878 = vmatpush1.bf16.msra.mxu1 %v3812_v25 }
 0x207   :  { %2879 = vmatprep.subr.bf16.mxu1 %v3817_v11 }
 0x20a   :  { %2880 = vmatpush2.bf16.msra.mxu1 %v3815_v48 }
 0x20b   :  { %2881 = vmatprep.subr.bf16.mxu1 %v3820_v12 }
 0x20e   :  { %2882 = vmatpush2.bf16.msra.mxu1 %v3818_v13 }
 0x20f   :  { %2883 = vmatprep.subr.bf16.mxu1 %v3823_v14 }
 0x212   :  { %2884 = vmatpush2.bf16.msra.mxu1 %v3821_v15 }
 0x213   :  { %2885 = vmatprep.subr.bf16.mxu1 %v3826_v16 }
 0x216   :  { %2886 = vmatpush2.bf16.msra.mxu1 %v3824_v18 }
 0x217   :  { %2887 = vmatprep.subr.bf16.mxu1 %v3829_v19 }
 0x21a   :  { %2888 = vmatpush2.bf16.msra.mxu1 %v3827_v20 }
 0x21b   :  { %2889 = vmatprep.subr.bf16.mxu1 %v3832_v21 }
 0x21e   :  { %2890 = vmatpush2.bf16.msra.mxu1 %v3830_v22 }
 0x21f   :  { %2891 = vmatprep.subr.bf16.mxu1 %v3835_v23 }
 0x222   :  { %2892 = vmatpush2.bf16.msra.mxu1 %v3833_v24 }
 0x223   :  { %2893 = vmatprep.subr.bf16.mxu1 %v3838_v17 }
 0x226   :  { %2894 = vmatpush2.bf16.msra.mxu1 %v3836_v26 }
 0x269   :  { %v1976_v27 = vpop.f32.mrf.mxu1 }
 0x26a   :  { %v2367_v36 = vadd.f32 %v4056_v0, %v1976_v27 }
 0x26b   :  { %v1978_v28 = vpop.f32.mrf.mxu1 }
 0x26c   :  { %v2369_v38 = vadd.f32 %v2368_v3, %v1978_v28 }
 0x26d   :  { %v1980_v29 = vpop.f32.mrf.mxu1 }
 0x26f   :  { %v1981_v30 = vpop.f32.mrf.mxu1 }
 0x285   :  { %v2640_v31 = vpop.f32.mrf.mxu0 }
 0x287   :  { %v2642_v5 = vpop.f32.mrf.mxu0 }
 0x289   :  { %v2644_v32 = vpop.f32.mrf.mxu0 }
 0x28b   :  { %v2645_v33 = vpop.f32.mrf.mxu0 }
 0x2a9   :  { %v2407_v37 = vpop.f32.mrf.mxu1 }
 0x2aa   :  { %v2408_v39 = vadd.f32 %v2407_v37, %v2367_v36 }
 0x2ab   :  { %v2409_v41 = vpop.f32.mrf.mxu1 }
 0x2ac   :  { %v2647_v43 = vadd.f32 %v2640_v31, %v2408_v39  ;;  %v2410_v45 = vadd.f32 %v2409_v41, %v2369_v38 }
 0x2ad   :  { %v2411_v47 = vpop.f32.mrf.mxu1 }
 0x2ae   :  { %v2657_v49 = vadd.f32 %v2652_v40, %v2647_v43  ;;  %v2648_v50 = vadd.f32 %v2642_v5, %v2410_v45 }
 0x2af   :  { %v2412_v51 = vpop.f32.mrf.mxu1 }
 0x2b0   :  { %v2658_v52 = vadd.f32 %v2656_v46, %v2648_v50  ;;  %v2659_v53 = vmax.f32 %v2657_v49, 0.0 }
 0x2b2   :  { %v2660_v54 = vmax.f32 %v2658_v52, 0.0  ;;  %v2661_v56 = vpack.c.bf16 %v2659_v53, %v2659_v53 }
 0x2b4   :  { %v2662_v55 = vpack.c.bf16 %v2660_v54, %v2660_v54 }
 0x2b6   :  { %2895 = vmatprep.mubr.bf16.mxu1 %v2662_v55 }
 0x2b7   :  { %2896 = vmatmul.mubr.bf16.vlgmr.msra.gmra.mxu1 %v2661_v56 }
 0x377   :  { %v2897_v60 = vpop.f32.mrf.mxu1 }
 0x378   :  { %v2898_v63 = vadd.f32 %v2897_v60, %v2698_v58 }
 0x379   :  { %v2899_v61 = vpop.f32.mrf.mxu1 }
 0x37a   :  { %v2900_v0 = vadd.f32 %v2899_v61, %v2702_v59 }
 0x37b   :  { %v2901_v1 = vpop.f32.mrf.mxu1 }
 0x37c   :  { %v2906_v3 = vcombine.low %v2898_v63, %v2900_v0 }
 0x37d   :  { %v2902_v4 = vpop.f32.mrf.mxu1 }
 0x37e   :  { %3294 = vst.sshfl [vmem:[#allocation10] sm:$0x33 pattern:$0x76325410] %v2906_v3 }
 0x37f   :  { %3930 = shalt.err (!%p3927_p10)
}
 0x380   :  { %2925 = dma.vmem_to_hbm [thread:$0]  %s2923_s3, 64, %s4072_s4, [#allocation4]  }
 0x381   :  { %3945 = dma.done.wait [#allocation4], 64  }
 0x382   :  { %3946 = vsyncadd [#allocation4], 4294967232 }
 0x383   :  { %2929 = vsyncpa [#allocation3], 1 }
 0x384   :  { %2930 = vsyncpa [#allocation6], 1 }
 0x385   :  { %2931 = vsyncpa [#allocation9], 1 }
 0x386   :  { %2932 = vsyncpa [#allocation4], 1 }

</bundles_post_ra>
